<compile_context>
chip_gen: v7x
topology: tpu7x:2x2x1
jax: 0.10.0
libtpu: 0.0.40
codegen_flags: <defaults>
</compile_context>

<pallas_src>
import functools

import jax
import jax.numpy as jnp
from jax.experimental import pallas as pl
from jax.experimental.pallas import tpu as pltpu


def _round_up(n, m):
    return ((n + m - 1) // m) * m


def _align(n):
    # 256-wide MXU tiles on v6e/v7x: round big dims to 256; small dims keep 128
    # (padding 64 -> 256 would only add wasted FLOPs).
    return _round_up(n, 256) if n >= 256 else _round_up(n, 128)


def _pad_axis(a, target, axis):
    pad = target - a.shape[axis]
    if pad <= 0:
        return a
    widths = [(0, 0)] * a.ndim
    widths[axis] = (0, pad)
    return jnp.pad(a, widths)


def _gcn9_fused_kernel(adj_ref, x_ref, w1_ref, b1_ref, ws_ref, bs_ref,
                       w9_ref, b9_ref, out_ref, *, num_mid):
    """Fused 9-layer GCN: h_{l+1} = relu(adj @ (h_l @ W_l) + b_l).

    adj / x / weights arrive pre-cast (bf16 by default) from the wrapper;
    biases arrive f32.  Matmuls accumulate f32; epilogue (bias + ReLU) is f32.
    """
    adj = adj_ref[...]
    mm_dtype = adj.dtype  # bf16 (default) or f32 MXU operand dtype

    def layer(h, w, b):
        support = jnp.dot(h, w, preferred_element_type=jnp.float32).astype(mm_dtype)
        out = jnp.dot(adj, support, preferred_element_type=jnp.float32)
        return jnp.maximum(out + b, 0.0)  # f32 epilogue

    h = x_ref[...]
    # Layer 1: (N, Fpad) -> (N, Hpad)
    h = layer(h, w1_ref[...], b1_ref[...]).astype(mm_dtype)
    # Layers 2..8 (statically unrolled; weights stacked along leading axis).
    for l in range(num_mid):
        h = layer(h, ws_ref[l], bs_ref[l]).astype(mm_dtype)
    # Layer 9: (N, Hpad) -> (N, Cpad); kept f32 straight into the output.
    h = layer(h, w9_ref[...], b9_ref[...])
    out_ref[...] = h.astype(out_ref.dtype)


def gcn_layer_9_forward(x, adj, params, *, use_bf16=True):
    """Forward pass of GCN_layer_9 (inference: dropout is identity)."""
    # TODO(synk): F.dropout with training=True not implemented; eval mode -> identity.
    n, nfeat = x.shape
    nhid = params[0][0].shape[1]
    nclass = params[-1][0].shape[1]

    npad = _align(n)
    fpad = _align(nfeat)
    hpad = _align(nhid)
    cpad = _align(nclass)

    mm_dtype = jnp.bfloat16 if use_bf16 else jnp.float32

    # Zero padding: padded adj COLUMNS, weight rows/cols and bias entries are 0,
    # so padded features contribute nothing to real rows.  Padded node ROWS end
    # up as relu(b) after the bias broadcast; they never feed back into real
    # rows (adj's padded columns are zero) and are sliced off before returning.
    adj_p = _pad_axis(_pad_axis(adj, npad, 0), npad, 1).astype(mm_dtype)
    x_p = _pad_axis(_pad_axis(x, npad, 0), fpad, 1).astype(mm_dtype)

    (w1, b1) = params[0]
    (w9, b9) = params[-1]
    mids = params[1:-1]
    num_mid = len(mids)

    w1_p = _pad_axis(_pad_axis(w1, fpad, 0), hpad, 1).astype(mm_dtype)   # (Fpad, Hpad)
    b1_p = _pad_axis(b1, hpad, 1).astype(jnp.float32)                    # (1, Hpad)
    ws_p = jnp.stack([_pad_axis(_pad_axis(w, hpad, 0), hpad, 1)
                      for (w, _) in mids]).astype(mm_dtype)              # (7, Hpad, Hpad)
    bs_p = jnp.stack([_pad_axis(b, hpad, 1)
                      for (_, b) in mids]).astype(jnp.float32)           # (7, 1, Hpad)
    w9_p = _pad_axis(_pad_axis(w9, hpad, 0), cpad, 1).astype(mm_dtype)   # (Hpad, Cpad)
    b9_p = _pad_axis(b9, cpad, 1).astype(jnp.float32)                    # (1, Cpad)

    kernel = functools.partial(_gcn9_fused_kernel, num_mid=num_mid)

    # Advisory cost estimate: 2 matmuls per layer (feature transform + adj agg).
    flops = 2 * (npad * fpad * hpad + npad * npad * hpad          # layer 1
                 + num_mid * (npad * hpad * hpad + npad * npad * hpad)  # layers 2..8
                 + npad * hpad * cpad + npad * npad * cpad)       # layer 9
    in_bytes = sum(int(a.size) * a.dtype.itemsize
                   for a in (adj_p, x_p, w1_p, b1_p, ws_p, bs_p, w9_p, b9_p))
    out_bytes = npad * cpad * 4
    cost = pl.CostEstimate(flops=int(flops), transcendentals=0,
                           bytes_accessed=int(in_bytes + out_bytes))

    vmem_spec = pl.BlockSpec(memory_space=pltpu.MemorySpace.VMEM)

    out_p = pl.pallas_call(
        kernel,
        out_shape=jax.ShapeDtypeStruct((npad, cpad), jnp.float32),
        # No grid: single invocation, whole arrays resident in VMEM (no
        # double-buffering of the pipeline-less inputs, adj DMA'd once).
        in_specs=[vmem_spec] * 8,
        out_specs=vmem_spec,
        compiler_params=pltpu.CompilerParams(
            # Well under the v7x 64 MiB physical VMEM; plenty for toy sizes.
            vmem_limit_bytes=32 * 1024 * 1024,
        ),
        cost_estimate=cost,
    )(adj_p, x_p, w1_p, b1_p, ws_p, bs_p, w9_p, b9_p)

    return out_p[:n, :nclass]


def gcn_layer_9_reference(x, adj, params):
    """Pure-JAX reference (high precision) for correctness checking."""
    h = x
    for (w, b) in params:
        support = jnp.dot(h, w, precision=jax.lax.Precision.HIGHEST,
                          preferred_element_type=jnp.float32)
        h = jnp.maximum(jnp.dot(adj, support, precision=jax.lax.Precision.HIGHEST,
                                preferred_element_type=jnp.float32) + b, 0.0)
    return h


def init_graph_conv(key, f_in, f_out):
    """Match PyTorch GraphConvolution.reset_parameters: U(-stdv, stdv), stdv=1/sqrt(f_out)."""
    kw, kb = jax.random.split(key)
    stdv = 1.0 / jnp.sqrt(jnp.float32(f_out))
    w = jax.random.uniform(kw, (f_in, f_out), jnp.float32, minval=-stdv, maxval=stdv)
    b = jax.random.uniform(kb, (1, f_out), jnp.float32, minval=-stdv, maxval=stdv)
    return w, b


def init_gcn_layer_9(key, nfeat, nhid, nclass):
    dims = [(nfeat, nhid)] + [(nhid, nhid)] * 7 + [(nhid, nclass)]
    keys = jax.random.split(key, len(dims))
    return [init_graph_conv(k, fi, fo) for k, (fi, fo) in zip(keys, dims)]


if __name__ == "__main__":
    key = jax.random.PRNGKey(0)
    k_x, k_adj, k_params = jax.random.split(key, 3)

    # Small graph: 128 nodes, 96 input features, hidden 64, 16 classes.
    N, NFEAT, NHID, NCLASS = 128, 96, 64, 16

    x = jax.random.normal(k_x, (N, NFEAT), jnp.float32)

    # Symmetric, row-normalized dense adjacency with self-loops.
    a = jax.random.uniform(k_adj, (N, N), jnp.float32)
    a = (a + a.T) * 0.5 + jnp.eye(N, dtype=jnp.float32)
    adj = a / jnp.sum(a, axis=1, keepdims=True)

    params = init_gcn_layer_9(k_params, NFEAT, NHID, NCLASS)

    # bf16 MXU operands by default (f32 accumulation + f32 epilogue).
    out = gcn_layer_9_forward(x, adj, params, use_bf16=True)
    out = jax.block_until_ready(out)

    ref = gcn_layer_9_reference(x, adj, params)

    assert out.shape == (N, NCLASS), out.shape
    assert out.dtype == jnp.float32
    assert bool(jnp.all(jnp.isfinite(out)))
    assert bool(jnp.allclose(out, ref, atol=2e-2, rtol=2e-2)), float(
        jnp.max(jnp.abs(out - ref)))
    print("KERNEL_OK")
</pallas_src>

<mosaic_0001>
module attributes {stable_mosaic.version = 11 : i64} {
  func.func @_gcn9_fused_kernel(%arg0: memref<128x128xbf16, #tpu.memory_space<vmem>>, %arg1: memref<128x128xbf16, #tpu.memory_space<vmem>>, %arg2: memref<128x128xbf16, #tpu.memory_space<vmem>>, %arg3: memref<1x128xf32, #tpu.memory_space<vmem>>, %arg4: memref<7x128x128xbf16, #tpu.memory_space<vmem>>, %arg5: memref<7x1x128xf32, #tpu.memory_space<vmem>>, %arg6: memref<128x128xbf16, #tpu.memory_space<vmem>>, %arg7: memref<1x128xf32, #tpu.memory_space<vmem>>, %arg8: memref<128x128xf32, #tpu.memory_space<vmem>>) attributes {dimension_semantics = [], scalar_prefetch = 0 : i64, scratch_operands = 0 : i64, tpu.core_type = #tpu.core_type<tc>} {
    %c0 = arith.constant 0 : index
    %c0_0 = arith.constant 0 : index
    %0 = vector.load %arg0[%c0, %c0_0] : memref<128x128xbf16, #tpu.memory_space<vmem>>, vector<128x128xbf16>
    %c0_1 = arith.constant 0 : index
    %c0_2 = arith.constant 0 : index
    %1 = vector.load %arg1[%c0_1, %c0_2] : memref<128x128xbf16, #tpu.memory_space<vmem>>, vector<128x128xbf16>
    %c0_3 = arith.constant 0 : index
    %c0_4 = arith.constant 0 : index
    %2 = vector.load %arg2[%c0_3, %c0_4] : memref<128x128xbf16, #tpu.memory_space<vmem>>, vector<128x128xbf16>
    %c0_5 = arith.constant 0 : index
    %c0_6 = arith.constant 0 : index
    %3 = vector.load %arg3[%c0_5, %c0_6] : memref<1x128xf32, #tpu.memory_space<vmem>>, vector<1x128xf32>
    %cst = arith.constant dense<0.000000e+00> : vector<128x128xf32>
    %4 = tpu.matmul %1, %2, %cst {dimension_numbers = #tpu.dot_dimension_numbers<[1], [0], [0], [1], [0, 0, 1, 1], [], []>} : vector<128x128xbf16>, vector<128x128xbf16>, vector<128x128xf32> -> vector<128x128xf32>
    %5 = arith.truncf %4 : vector<128x128xf32> to vector<128x128xbf16>
    %cst_7 = arith.constant dense<0.000000e+00> : vector<128x128xf32>
    %6 = tpu.matmul %0, %5, %cst_7 {dimension_numbers = #tpu.dot_dimension_numbers<[1], [0], [0], [1], [0, 0, 1, 1], [], []>} : vector<128x128xbf16>, vector<128x128xbf16>, vector<128x128xf32> -> vector<128x128xf32>
    %7 = vector.broadcast %3 : vector<1x128xf32> to vector<128x128xf32>
    %8 = arith.addf %6, %7 : vector<128x128xf32>
    %cst_8 = arith.constant 0.000000e+00 : f32
    %9 = vector.broadcast %cst_8 : f32 to vector<128x128xf32>
    %10 = arith.maximumf %8, %9 : vector<128x128xf32>
    %11 = arith.truncf %10 : vector<128x128xf32> to vector<128x128xbf16>
    %c0_9 = arith.constant 0 : index
    %c0_10 = arith.constant 0 : index
    %c0_11 = arith.constant 0 : index
    %12 = vector.load %arg4[%c0_9, %c0_10, %c0_11] : memref<7x128x128xbf16, #tpu.memory_space<vmem>>, vector<1x128x128xbf16>
    %13 = vector.shape_cast %12 : vector<1x128x128xbf16> to vector<128x128xbf16>
    %c0_12 = arith.constant 0 : index
    %c0_13 = arith.constant 0 : index
    %c0_14 = arith.constant 0 : index
    %14 = vector.load %arg5[%c0_12, %c0_13, %c0_14] : memref<7x1x128xf32, #tpu.memory_space<vmem>>, vector<1x1x128xf32>
    %15 = vector.shape_cast %14 : vector<1x1x128xf32> to vector<1x128xf32>
    %cst_15 = arith.constant dense<0.000000e+00> : vector<128x128xf32>
    %16 = tpu.matmul %11, %13, %cst_15 {dimension_numbers = #tpu.dot_dimension_numbers<[1], [0], [0], [1], [0, 0, 1, 1], [], []>} : vector<128x128xbf16>, vector<128x128xbf16>, vector<128x128xf32> -> vector<128x128xf32>
    %17 = arith.truncf %16 : vector<128x128xf32> to vector<128x128xbf16>
    %cst_16 = arith.constant dense<0.000000e+00> : vector<128x128xf32>
    %18 = tpu.matmul %0, %17, %cst_16 {dimension_numbers = #tpu.dot_dimension_numbers<[1], [0], [0], [1], [0, 0, 1, 1], [], []>} : vector<128x128xbf16>, vector<128x128xbf16>, vector<128x128xf32> -> vector<128x128xf32>
    %19 = vector.broadcast %15 : vector<1x128xf32> to vector<128x128xf32>
    %20 = arith.addf %18, %19 : vector<128x128xf32>
    %cst_17 = arith.constant 0.000000e+00 : f32
    %21 = vector.broadcast %cst_17 : f32 to vector<128x128xf32>
    %22 = arith.maximumf %20, %21 : vector<128x128xf32>
    %23 = arith.truncf %22 : vector<128x128xf32> to vector<128x128xbf16>
    %c1 = arith.constant 1 : index
    %c0_18 = arith.constant 0 : index
    %c0_19 = arith.constant 0 : index
    %24 = vector.load %arg4[%c1, %c0_18, %c0_19] : memref<7x128x128xbf16, #tpu.memory_space<vmem>>, vector<1x128x128xbf16>
    %25 = vector.shape_cast %24 : vector<1x128x128xbf16> to vector<128x128xbf16>
    %c1_20 = arith.constant 1 : index
    %c0_21 = arith.constant 0 : index
    %c0_22 = arith.constant 0 : index
    %26 = vector.load %arg5[%c1_20, %c0_21, %c0_22] : memref<7x1x128xf32, #tpu.memory_space<vmem>>, vector<1x1x128xf32>
    %27 = vector.shape_cast %26 : vector<1x1x128xf32> to vector<1x128xf32>
    %cst_23 = arith.constant dense<0.000000e+00> : vector<128x128xf32>
    %28 = tpu.matmul %23, %25, %cst_23 {dimension_numbers = #tpu.dot_dimension_numbers<[1], [0], [0], [1], [0, 0, 1, 1], [], []>} : vector<128x128xbf16>, vector<128x128xbf16>, vector<128x128xf32> -> vector<128x128xf32>
    %29 = arith.truncf %28 : vector<128x128xf32> to vector<128x128xbf16>
    %cst_24 = arith.constant dense<0.000000e+00> : vector<128x128xf32>
    %30 = tpu.matmul %0, %29, %cst_24 {dimension_numbers = #tpu.dot_dimension_numbers<[1], [0], [0], [1], [0, 0, 1, 1], [], []>} : vector<128x128xbf16>, vector<128x128xbf16>, vector<128x128xf32> -> vector<128x128xf32>
    %31 = vector.broadcast %27 : vector<1x128xf32> to vector<128x128xf32>
    %32 = arith.addf %30, %31 : vector<128x128xf32>
    %cst_25 = arith.constant 0.000000e+00 : f32
    %33 = vector.broadcast %cst_25 : f32 to vector<128x128xf32>
    %34 = arith.maximumf %32, %33 : vector<128x128xf32>
    %35 = arith.truncf %34 : vector<128x128xf32> to vector<128x128xbf16>
    %c2 = arith.constant 2 : index
    %c0_26 = arith.constant 0 : index
    %c0_27 = arith.constant 0 : index
    %36 = vector.load %arg4[%c2, %c0_26, %c0_27] : memref<7x128x128xbf16, #tpu.memory_space<vmem>>, vector<1x128x128xbf16>
    %37 = vector.shape_cast %36 : vector<1x128x128xbf16> to vector<128x128xbf16>
    %c2_28 = arith.constant 2 : index
    %c0_29 = arith.constant 0 : index
    %c0_30 = arith.constant 0 : index
    %38 = vector.load %arg5[%c2_28, %c0_29, %c0_30] : memref<7x1x128xf32, #tpu.memory_space<vmem>>, vector<1x1x128xf32>
    %39 = vector.shape_cast %38 : vector<1x1x128xf32> to vector<1x128xf32>
    %cst_31 = arith.constant dense<0.000000e+00> : vector<128x128xf32>
    %40 = tpu.matmul %35, %37, %cst_31 {dimension_numbers = #tpu.dot_dimension_numbers<[1], [0], [0], [1], [0, 0, 1, 1], [], []>} : vector<128x128xbf16>, vector<128x128xbf16>, vector<128x128xf32> -> vector<128x128xf32>
    %41 = arith.truncf %40 : vector<128x128xf32> to vector<128x128xbf16>
    %cst_32 = arith.constant dense<0.000000e+00> : vector<128x128xf32>
    %42 = tpu.matmul %0, %41, %cst_32 {dimension_numbers = #tpu.dot_dimension_numbers<[1], [0], [0], [1], [0, 0, 1, 1], [], []>} : vector<128x128xbf16>, vector<128x128xbf16>, vector<128x128xf32> -> vector<128x128xf32>
    %43 = vector.broadcast %39 : vector<1x128xf32> to vector<128x128xf32>
    %44 = arith.addf %42, %43 : vector<128x128xf32>
    %cst_33 = arith.constant 0.000000e+00 : f32
    %45 = vector.broadcast %cst_33 : f32 to vector<128x128xf32>
    %46 = arith.maximumf %44, %45 : vector<128x128xf32>
    %47 = arith.truncf %46 : vector<128x128xf32> to vector<128x128xbf16>
    %c3 = arith.constant 3 : index
    %c0_34 = arith.constant 0 : index
    %c0_35 = arith.constant 0 : index
    %48 = vector.load %arg4[%c3, %c0_34, %c0_35] : memref<7x128x128xbf16, #tpu.memory_space<vmem>>, vector<1x128x128xbf16>
    %49 = vector.shape_cast %48 : vector<1x128x128xbf16> to vector<128x128xbf16>
    %c3_36 = arith.constant 3 : index
    %c0_37 = arith.constant 0 : index
    %c0_38 = arith.constant 0 : index
    %50 = vector.load %arg5[%c3_36, %c0_37, %c0_38] : memref<7x1x128xf32, #tpu.memory_space<vmem>>, vector<1x1x128xf32>
    %51 = vector.shape_cast %50 : vector<1x1x128xf32> to vector<1x128xf32>
    %cst_39 = arith.constant dense<0.000000e+00> : vector<128x128xf32>
    %52 = tpu.matmul %47, %49, %cst_39 {dimension_numbers = #tpu.dot_dimension_numbers<[1], [0], [0], [1], [0, 0, 1, 1], [], []>} : vector<128x128xbf16>, vector<128x128xbf16>, vector<128x128xf32> -> vector<128x128xf32>
    %53 = arith.truncf %52 : vector<128x128xf32> to vector<128x128xbf16>
    %cst_40 = arith.constant dense<0.000000e+00> : vector<128x128xf32>
    %54 = tpu.matmul %0, %53, %cst_40 {dimension_numbers = #tpu.dot_dimension_numbers<[1], [0], [0], [1], [0, 0, 1, 1], [], []>} : vector<128x128xbf16>, vector<128x128xbf16>, vector<128x128xf32> -> vector<128x128xf32>
    %55 = vector.broadcast %51 : vector<1x128xf32> to vector<128x128xf32>
    %56 = arith.addf %54, %55 : vector<128x128xf32>
    %cst_41 = arith.constant 0.000000e+00 : f32
    %57 = vector.broadcast %cst_41 : f32 to vector<128x128xf32>
    %58 = arith.maximumf %56, %57 : vector<128x128xf32>
    %59 = arith.truncf %58 : vector<128x128xf32> to vector<128x128xbf16>
    %c4 = arith.constant 4 : index
    %c0_42 = arith.constant 0 : index
    %c0_43 = arith.constant 0 : index
    %60 = vector.load %arg4[%c4, %c0_42, %c0_43] : memref<7x128x128xbf16, #tpu.memory_space<vmem>>, vector<1x128x128xbf16>
    %61 = vector.shape_cast %60 : vector<1x128x128xbf16> to vector<128x128xbf16>
    %c4_44 = arith.constant 4 : index
    %c0_45 = arith.constant 0 : index
    %c0_46 = arith.constant 0 : index
    %62 = vector.load %arg5[%c4_44, %c0_45, %c0_46] : memref<7x1x128xf32, #tpu.memory_space<vmem>>, vector<1x1x128xf32>
    %63 = vector.shape_cast %62 : vector<1x1x128xf32> to vector<1x128xf32>
    %cst_47 = arith.constant dense<0.000000e+00> : vector<128x128xf32>
    %64 = tpu.matmul %59, %61, %cst_47 {dimension_numbers = #tpu.dot_dimension_numbers<[1], [0], [0], [1], [0, 0, 1, 1], [], []>} : vector<128x128xbf16>, vector<128x128xbf16>, vector<128x128xf32> -> vector<128x128xf32>
    %65 = arith.truncf %64 : vector<128x128xf32> to vector<128x128xbf16>
    %cst_48 = arith.constant dense<0.000000e+00> : vector<128x128xf32>
    %66 = tpu.matmul %0, %65, %cst_48 {dimension_numbers = #tpu.dot_dimension_numbers<[1], [0], [0], [1], [0, 0, 1, 1], [], []>} : vector<128x128xbf16>, vector<128x128xbf16>, vector<128x128xf32> -> vector<128x128xf32>
    %67 = vector.broadcast %63 : vector<1x128xf32> to vector<128x128xf32>
    %68 = arith.addf %66, %67 : vector<128x128xf32>
    %cst_49 = arith.constant 0.000000e+00 : f32
    %69 = vector.broadcast %cst_49 : f32 to vector<128x128xf32>
    %70 = arith.maximumf %68, %69 : vector<128x128xf32>
    %71 = arith.truncf %70 : vector<128x128xf32> to vector<128x128xbf16>
    %c5 = arith.constant 5 : index
    %c0_50 = arith.constant 0 : index
    %c0_51 = arith.constant 0 : index
    %72 = vector.load %arg4[%c5, %c0_50, %c0_51] : memref<7x128x128xbf16, #tpu.memory_space<vmem>>, vector<1x128x128xbf16>
    %73 = vector.shape_cast %72 : vector<1x128x128xbf16> to vector<128x128xbf16>
    %c5_52 = arith.constant 5 : index
    %c0_53 = arith.constant 0 : index
    %c0_54 = arith.constant 0 : index
    %74 = vector.load %arg5[%c5_52, %c0_53, %c0_54] : memref<7x1x128xf32, #tpu.memory_space<vmem>>, vector<1x1x128xf32>
    %75 = vector.shape_cast %74 : vector<1x1x128xf32> to vector<1x128xf32>
    %cst_55 = arith.constant dense<0.000000e+00> : vector<128x128xf32>
    %76 = tpu.matmul %71, %73, %cst_55 {dimension_numbers = #tpu.dot_dimension_numbers<[1], [0], [0], [1], [0, 0, 1, 1], [], []>} : vector<128x128xbf16>, vector<128x128xbf16>, vector<128x128xf32> -> vector<128x128xf32>
    %77 = arith.truncf %76 : vector<128x128xf32> to vector<128x128xbf16>
    %cst_56 = arith.constant dense<0.000000e+00> : vector<128x128xf32>
    %78 = tpu.matmul %0, %77, %cst_56 {dimension_numbers = #tpu.dot_dimension_numbers<[1], [0], [0], [1], [0, 0, 1, 1], [], []>} : vector<128x128xbf16>, vector<128x128xbf16>, vector<128x128xf32> -> vector<128x128xf32>
    %79 = vector.broadcast %75 : vector<1x128xf32> to vector<128x128xf32>
    %80 = arith.addf %78, %79 : vector<128x128xf32>
    %cst_57 = arith.constant 0.000000e+00 : f32
    %81 = vector.broadcast %cst_57 : f32 to vector<128x128xf32>
    %82 = arith.maximumf %80, %81 : vector<128x128xf32>
    %83 = arith.truncf %82 : vector<128x128xf32> to vector<128x128xbf16>
    %c6 = arith.constant 6 : index
    %c0_58 = arith.constant 0 : index
    %c0_59 = arith.constant 0 : index
    %84 = vector.load %arg4[%c6, %c0_58, %c0_59] : memref<7x128x128xbf16, #tpu.memory_space<vmem>>, vector<1x128x128xbf16>
    %85 = vector.shape_cast %84 : vector<1x128x128xbf16> to vector<128x128xbf16>
    %c6_60 = arith.constant 6 : index
    %c0_61 = arith.constant 0 : index
    %c0_62 = arith.constant 0 : index
    %86 = vector.load %arg5[%c6_60, %c0_61, %c0_62] : memref<7x1x128xf32, #tpu.memory_space<vmem>>, vector<1x1x128xf32>
    %87 = vector.shape_cast %86 : vector<1x1x128xf32> to vector<1x128xf32>
    %cst_63 = arith.constant dense<0.000000e+00> : vector<128x128xf32>
    %88 = tpu.matmul %83, %85, %cst_63 {dimension_numbers = #tpu.dot_dimension_numbers<[1], [0], [0], [1], [0, 0, 1, 1], [], []>} : vector<128x128xbf16>, vector<128x128xbf16>, vector<128x128xf32> -> vector<128x128xf32>
    %89 = arith.truncf %88 : vector<128x128xf32> to vector<128x128xbf16>
    %cst_64 = arith.constant dense<0.000000e+00> : vector<128x128xf32>
    %90 = tpu.matmul %0, %89, %cst_64 {dimension_numbers = #tpu.dot_dimension_numbers<[1], [0], [0], [1], [0, 0, 1, 1], [], []>} : vector<128x128xbf16>, vector<128x128xbf16>, vector<128x128xf32> -> vector<128x128xf32>
    %91 = vector.broadcast %87 : vector<1x128xf32> to vector<128x128xf32>
    %92 = arith.addf %90, %91 : vector<128x128xf32>
    %cst_65 = arith.constant 0.000000e+00 : f32
    %93 = vector.broadcast %cst_65 : f32 to vector<128x128xf32>
    %94 = arith.maximumf %92, %93 : vector<128x128xf32>
    %95 = arith.truncf %94 : vector<128x128xf32> to vector<128x128xbf16>
    %c0_66 = arith.constant 0 : index
    %c0_67 = arith.constant 0 : index
    %96 = vector.load %arg6[%c0_66, %c0_67] : memref<128x128xbf16, #tpu.memory_space<vmem>>, vector<128x128xbf16>
    %c0_68 = arith.constant 0 : index
    %c0_69 = arith.constant 0 : index
    %97 = vector.load %arg7[%c0_68, %c0_69] : memref<1x128xf32, #tpu.memory_space<vmem>>, vector<1x128xf32>
    %cst_70 = arith.constant dense<0.000000e+00> : vector<128x128xf32>
    %98 = tpu.matmul %95, %96, %cst_70 {dimension_numbers = #tpu.dot_dimension_numbers<[1], [0], [0], [1], [0, 0, 1, 1], [], []>} : vector<128x128xbf16>, vector<128x128xbf16>, vector<128x128xf32> -> vector<128x128xf32>
    %99 = arith.truncf %98 : vector<128x128xf32> to vector<128x128xbf16>
    %cst_71 = arith.constant dense<0.000000e+00> : vector<128x128xf32>
    %100 = tpu.matmul %0, %99, %cst_71 {dimension_numbers = #tpu.dot_dimension_numbers<[1], [0], [0], [1], [0, 0, 1, 1], [], []>} : vector<128x128xbf16>, vector<128x128xbf16>, vector<128x128xf32> -> vector<128x128xf32>
    %101 = vector.broadcast %97 : vector<1x128xf32> to vector<128x128xf32>
    %102 = arith.addf %100, %101 : vector<128x128xf32>
    %cst_72 = arith.constant 0.000000e+00 : f32
    %103 = vector.broadcast %cst_72 : f32 to vector<128x128xf32>
    %104 = arith.maximumf %102, %103 : vector<128x128xf32>
    %c0_73 = arith.constant 0 : index
    %c0_74 = arith.constant 0 : index
    %105 = vector.load %arg8[%c0_73, %c0_74] : memref<128x128xf32, #tpu.memory_space<vmem>>, vector<128x128xf32>
    tpu.vector_store %arg8[%c0_73, %c0_74], %104 {strides = array<i32>} : memref<128x128xf32, #tpu.memory_space<vmem>>, vector<128x128xf32>,
    return
  }
}

</mosaic_0001>

<bundles_post_ra>
// kernel: tpu_custom_call.1
= control target key start
LH: loop header
LB: loop body
LE: loop exit
PB: predicated region body
PF: predicated region fallthrough
CT: control target
= control target key end

     0   :  { %13 = vsyncpa [#allocation3], 0  ;;  %s4439_s0 = inlined_call_operand.hbm [shape: bf16[128,128], index: 0, kind: input, shape index: {}]   ;;  %s4440_s1 = inlined_call_operand.hbm [shape: bf16[128,128], index: 1, kind: input, shape index: {}]   ;;  %s4441_s2 = inlined_call_operand.hbm [shape: bf16[128,128], index: 2, kind: input, shape index: {}]   ;;  %s4442_s3 = inlined_call_operand.vmem [shape: f32[1,128], index: 3, kind: input, shape index: {}]   ;;  %s4443_s4 = inlined_call_operand.hbm [shape: bf16[7,128,128], index: 4, kind: input, shape index: {}]   ;;  %s4444_s5 = inlined_call_operand.vmem [shape: f32[7,1,128], index: 5, kind: input, shape index: {}]   ;;  %s4445_s6 = inlined_call_operand.hbm [shape: bf16[128,128], index: 6, kind: input, shape index: {}]   ;;  %s4446_s7 = inlined_call_operand.vmem [shape: f32[1,128], index: 7, kind: input, shape index: {}]   ;;  %s4447_s8 = inlined_call_operand.hbm [shape: f32[128,128], index: 8, kind: output, shape index: {}]  }
   0x1   :  { %14 = vsyncpa [#allocation6], 0 }
   0x2   :  { %15 = vsyncpa [#allocation9], 0 }
   0x3   :  { %16 = vsyncpa [#allocation4], 0  ;;  %s4159_s27 = smov [#allocation5]   ;;  %s4160_s29 = smov [#allocation8]  }
   0x4   :  { %s34_s28 = sshll.u32 %s4159_s27, 4  ;;  %s60_s30 = sshll.u32 %s4160_s29, 4  ;;  %s35_s28 = int_to_ptr.vmem [resolvable:$true] %s34_s28  ;;  %s4214_s30 = int_to_ptr.vmem [resolvable:$true] %s60_s30 }
   0x5   :  { %s4019_s11 = scalar_lea.hbm %s4440_s1, 1024 }
   0x6   :  { %p4020_p0 = scmp.ne.s32.totalorder %s4440_s1, %s4019_s11  ;;  %p4023_p1 = scmp.lt.u32.totalorder %s4019_s11, %s4440_s1 }
   0x8   :  { %p4025_p2 = pnand %p4023_p1, %p4020_p0 }
   0xa   :  { %4028 = shalt.err (!%p4025_p2)
}
   0xb   :  { %s4029_s16 = scalar_lea.vmem %s35_s28, 1024  ;;  %p4034_p4 = scmp.lt.s32.totalorder %s35_s28, %s35_s28 }
   0xc   :  { %p4030_p3 = scmp.ne.s32.totalorder %s35_s28, %s4029_s16  ;;  %p4035_p5 = scmp.lt.s32.totalorder %s4029_s16, %s4029_s16 }
   0xe   :  { %p4036_p6 = por %p4035_p5, %p4034_p4 }
  0x10   :  { %p4037_p7 = pnand %p4036_p6, %p4030_p3 }
  0x12   :  { %4040 = shalt.err (!%p4037_p7)
}
  0x13   :  { %s4161_s17 = smov 64   ;;  %s4162_s18 = smov 4  }
  0x14   :  { %40 = dma.hbm_to_vmem [thread:$0]  %s4440_s1, 1024, %s35_s28, [#allocation6], %s4161_s17, %s4161_s17, %s4162_s18  }
  0x15   :  { %s4041_s23 = scalar_lea.hbm %s4443_s4, 7168 }
  0x16   :  { %p4042_p8 = scmp.ne.s32.totalorder %s4443_s4, %s4041_s23  ;;  %p4045_p9 = scmp.lt.u32.totalorder %s4041_s23, %s4443_s4 }
  0x18   :  { %p4047_p10 = pnand %p4045_p9, %p4042_p8 }
  0x1a   :  { %4050 = shalt.err (!%p4047_p10)
}
  0x1b   :  { %s4051_s29 = scalar_lea.vmem %s4214_s30, 7168  ;;  %p4056_p12 = scmp.lt.s32.totalorder %s4214_s30, %s4214_s30 }
  0x1c   :  { %p4052_p11 = scmp.ne.s32.totalorder %s4214_s30, %s4051_s29  ;;  %p4057_p13 = scmp.lt.s32.totalorder %s4051_s29, %s4051_s29 }
  0x1e   :  { %p4058_p0 = por %p4057_p13, %p4056_p12 }
  0x20   :  { %p4059_p1 = pnand %p4058_p0, %p4052_p11 }
  0x22   :  { %4062 = shalt.err (!%p4059_p1)
}
  0x23   :  { %66 = dma.hbm_to_vmem [thread:$0]  %s4443_s4, 7168, %s4214_s30, [#allocation9], %s4161_s17, %s4161_s17, %s4162_s18  }
  0x24   :  { %s4163_s9 = smov [#allocation2]   ;;  %s4164_s11 = smov [#allocation7]  }
  0x25   :  { %s22_s10 = sshll.u32 %s4163_s9, 4  ;;  %s46_s12 = sshll.u32 %s4164_s11, 4  ;;  %s23_s10 = int_to_ptr.vmem [resolvable:$true] %s22_s10  ;;  %s4251_s12 = int_to_ptr.vmem [resolvable:$true] %s46_s12 }
  0x26   :  { %s4063_s15 = scalar_lea.hbm %s4439_s0, 1024 }
  0x27   :  { %p4064_p2 = scmp.ne.s32.totalorder %s4439_s0, %s4063_s15  ;;  %p4067_p3 = scmp.lt.u32.totalorder %s4063_s15, %s4439_s0 }
  0x29   :  { %p4069_p4 = pnand %p4067_p3, %p4064_p2 }
  0x2b   :  { %4072 = shalt.err (!%p4069_p4)
}
  0x2c   :  { %s4073_s4 = scalar_lea.vmem %s23_s10, 1024  ;;  %p4078_p6 = scmp.lt.s32.totalorder %s23_s10, %s23_s10 }
  0x2d   :  { %p4074_p5 = scmp.ne.s32.totalorder %s23_s10, %s4073_s4  ;;  %p4079_p7 = scmp.lt.s32.totalorder %s4073_s4, %s4073_s4 }
  0x2f   :  { %p4080_p8 = por %p4079_p7, %p4078_p6 }
  0x31   :  { %p4081_p9 = pnand %p4080_p8, %p4074_p5 }
  0x33   :  { %4084 = shalt.err (!%p4081_p9)
}
  0x34   :  { %28 = dma.hbm_to_vmem [thread:$0]  %s4439_s0, 1024, %s23_s10, [#allocation3], %s4161_s17, %s4161_s17, %s4162_s18  }
  0x35   :  { %s4085_s25 = scalar_lea.hbm %s4441_s2, 1024 }
  0x36   :  { %p4086_p10 = scmp.ne.s32.totalorder %s4441_s2, %s4085_s25  ;;  %p4089_p11 = scmp.lt.u32.totalorder %s4085_s25, %s4441_s2 }
  0x38   :  { %p4091_p12 = pnand %p4089_p11, %p4086_p10 }
  0x3a   :  { %4094 = shalt.err (!%p4091_p12)
}
  0x3b   :  { %s4095_s28 = scalar_lea.vmem %s4251_s12, 1024  ;;  %p4100_p0 = scmp.lt.s32.totalorder %s4251_s12, %s4251_s12 }
  0x3c   :  { %p4096_p13 = scmp.ne.s32.totalorder %s4251_s12, %s4095_s28  ;;  %p4101_p1 = scmp.lt.s32.totalorder %s4095_s28, %s4095_s28 }
  0x3e   :  { %p4102_p2 = por %p4101_p1, %p4100_p0 }
  0x40   :  { %p4103_p3 = pnand %p4102_p2, %p4096_p13 }
  0x42   :  { %4106 = shalt.err (!%p4103_p3)
}
  0x43   :  { %52 = dma.hbm_to_vmem [thread:$0]  %s4441_s2, 1024, %s4251_s12, [#allocation6], %s4161_s17, %s4161_s17, %s4162_s18  }
  0x44   :  { %s4165_s10 = smov [#allocation10]   ;;  %s4107_s15 = scalar_lea.hbm %s4445_s6, 1024 }
  0x45   :  { %s74_s11 = sshll.u32 %s4165_s10, 4  ;;  %p4108_p4 = scmp.ne.s32.totalorder %s4445_s6, %s4107_s15  ;;  %s75_s11 = int_to_ptr.vmem [resolvable:$true] %s74_s11 }
  0x46   :  { %p4111_p5 = scmp.lt.u32.totalorder %s4107_s15, %s4445_s6 }
  0x48   :  { %p4113_p6 = pnand %p4111_p5, %p4108_p4 }
  0x4a   :  { %4116 = shalt.err (!%p4113_p6)
}
  0x4b   :  { %s4117_s4 = scalar_lea.vmem %s75_s11, 1024  ;;  %p4122_p8 = scmp.lt.s32.totalorder %s75_s11, %s75_s11 }
  0x4c   :  { %p4118_p7 = scmp.ne.s32.totalorder %s75_s11, %s4117_s4  ;;  %p4123_p9 = scmp.lt.s32.totalorder %s4117_s4, %s4117_s4 }
  0x4e   :  { %p4124_p10 = por %p4123_p9, %p4122_p8 }
  0x50   :  { %p4125_p11 = pnand %p4124_p10, %p4118_p7 }
  0x52   :  { %4128 = shalt.err (!%p4125_p11)
}
  0x53   :  { %80 = dma.hbm_to_vmem [thread:$0]  %s4445_s6, 1024, %s75_s11, [#allocation9], %s4161_s17, %s4161_s17, %s4162_s18  }
  0x54   :  { %4151 = dma.done.wait [#allocation3], 1024  }
  0x55   :  { %4152 = vsyncadd [#allocation3], 4294966272 }
  0x56   :  { %4153 = dma.done.wait [#allocation6], 2048  }
  0x57   :  { %4154 = vsyncadd [#allocation6], 4294965248 }
  0x58   :  { %4155 = dma.done.wait [#allocation9], 8192  }
  0x59   :  { %4156 = vsyncadd [#allocation9], 4294959104  ;;  %v3916_v0 = vld [vmem:[#allocation7] sm:$0xff]   ;;  %v3917_v1 = vld [vmem:[#allocation7 + $0x8] sm:$0xff]  }
  0x5a   :  { %3330 = vmatprep.subr.bf16.mxu0 %v3916_v0  ;;  %v3918_v2 = vld [vmem:[#allocation7 + $0x10] sm:$0xff]   ;;  %v3919_v3 = vld [vmem:[#allocation7 + $0x18] sm:$0xff]   ;;  %v3924_v4 = vld [vmem:[#allocation5] sm:$0xff]  }
  0x5b   :  { %3331 = vmatpush3.bf16.msra.mxu0 %v3916_v0  ;;  %3346 = vmatprep.mubr.bf16.mxu0 %v3924_v4  ;;  %v3920_v5 = vld [vmem:[#allocation7 + $0x20] sm:$0xff]   ;;  %v3921_v6 = vld [vmem:[#allocation7 + $0x28] sm:$0xff]   ;;  %v3922_v7 = vld [vmem:[#allocation7 + $0x30] sm:$0xff]  }
  0x5c   :  { %3332 = vmatprep.subr.bf16.mxu0 %v3917_v1  ;;  %v3923_v8 = vld [vmem:[#allocation7 + $0x38] sm:$0xff]   ;;  %v3925_v9 = vld [vmem:[#allocation5 + $0x8] sm:$0xff]   ;;  %v3926_v10 = vld [vmem:[#allocation5 + $0x10] sm:$0xff]  }
  0x5d   :  { %v3927_v11 = vld [vmem:[#allocation5 + $0x18] sm:$0xff]   ;;  %v3928_v12 = vld [vmem:[#allocation5 + $0x20] sm:$0xff]   ;;  %v3929_v13 = vld [vmem:[#allocation5 + $0x28] sm:$0xff]  }
  0x5e   :  { %v3930_v14 = vld [vmem:[#allocation5 + $0x30] sm:$0xff]   ;;  %v3931_v15 = vld [vmem:[#allocation5 + $0x38] sm:$0xff]   ;;  %v4303_v16 = vld [vmem:[#allocation2] sm:$0xff]  }
  0x5f   :  { %3333 = vmatpush3.bf16.msra.mxu0 %v3917_v1  ;;  %3378 = vmatprep.mubr.bf16.mxu1 %v4303_v16  ;;  %v3940_v17 = vld [vmem:[#allocation8] sm:$0xff]   ;;  %v3941_v18 = vld [vmem:[#allocation8 + $0x8] sm:$0xff]   ;;  %v3942_v19 = vld [vmem:[#allocation8 + $0x10] sm:$0xff]  }
  0x60   :  { %3334 = vmatprep.subr.bf16.mxu0 %v3918_v2  ;;  %v3943_v20 = vld [vmem:[#allocation8 + $0x18] sm:$0xff]   ;;  %v3944_v21 = vld [vmem:[#allocation8 + $0x20] sm:$0xff]   ;;  %v3945_v22 = vld [vmem:[#allocation8 + $0x28] sm:$0xff]  }
  0x61   :  { %v4306_v47 = vld [vmem:[#allocation2 + $0x8] sm:$0xff]   ;;  %v4308_v48 = vld [vmem:[#allocation2 + $0x10] sm:$0xff]   ;;  %v4312_v49 = vld [vmem:[#allocation2 + $0x18] sm:$0xff]  }
  0x62   :  { %v4314_v50 = vld [vmem:[#allocation2 + $0x20] sm:$0xff]   ;;  %v4318_v51 = vld [vmem:[#allocation2 + $0x28] sm:$0xff]   ;;  %v4320_v52 = vld [vmem:[#allocation2 + $0x30] sm:$0xff]  }
  0x63   :  { %3335 = vmatpush3.bf16.msra.mxu0 %v3918_v2  ;;  %v4324_v53 = vld [vmem:[#allocation2 + $0x38] sm:$0xff]   ;;  %v3946_v54 = vld [vmem:[#allocation8 + $0x30] sm:$0xff]   ;;  %v2955_v56 = vld [vmem:[%s4442_s3] ss:$0 sm:$0xff] }
  0x64   :  { %3336 = vmatprep.subr.bf16.mxu0 %v3919_v3  ;;  %v3947_v55 = vld [vmem:[#allocation8 + $0x38] sm:$0xff]  }
  0x67   :  { %3337 = vmatpush3.bf16.msra.mxu0 %v3919_v3 }
  0x68   :  { %3338 = vmatprep.subr.bf16.mxu0 %v3920_v5 }
  0x6b   :  { %3339 = vmatpush3.bf16.msra.mxu0 %v3920_v5 }
  0x6c   :  { %3340 = vmatprep.subr.bf16.mxu0 %v3921_v6 }
  0x6f   :  { %3341 = vmatpush3.bf16.msra.mxu0 %v3921_v6 }
  0x70   :  { %3342 = vmatprep.subr.bf16.mxu0 %v3922_v7 }
  0x73   :  { %3343 = vmatpush3.bf16.msra.mxu0 %v3922_v7 }
  0x74   :  { %3344 = vmatprep.subr.bf16.mxu0 %v3923_v8 }
  0x77   :  { %3345 = vmatpush3.bf16.msra.mxu0 %v3923_v8 }
  0x78   :  { %3394 = vmatprep.subr.bf16.mxu0 %v3940_v17 }
  0x7a   :  { %3347 = vmatmul.mubr.bf16.vlgmr.msra.gmra.mrb[0].mxu0 %v3925_v9 }
  0x7b   :  { %3350 = vmatprep.mubr.bf16.mxu0 %v3926_v10  ;;  %3395 = vmatpush3.bf16.msra.mxu0 %v3940_v17 }
  0x7c   :  { %3396 = vmatprep.subr.bf16.mxu0 %v3941_v18 }
  0x7f   :  { %3397 = vmatpush3.bf16.msra.mxu0 %v3941_v18 }
  0x80   :  { %3398 = vmatprep.subr.bf16.mxu0 %v3942_v19 }
  0x82   :  { %3351 = vmatmul.mubr.bf16.gmra.mrb[4].mxu0 %v3927_v11 }
  0x83   :  { %3354 = vmatprep.mubr.bf16.mxu0 %v3928_v12  ;;  %3399 = vmatpush3.bf16.msra.mxu0 %v3942_v19 }
  0x84   :  { %3400 = vmatprep.subr.bf16.mxu0 %v3943_v20 }
  0x87   :  { %3401 = vmatpush3.bf16.msra.mxu0 %v3943_v20 }
  0x88   :  { %3402 = vmatprep.subr.bf16.mxu0 %v3944_v21 }
  0x8a   :  { %3355 = vmatmul.mubr.bf16.gmra.mrb[8].mxu0 %v3929_v13 }
  0x8b   :  { %3358 = vmatprep.mubr.bf16.mxu0 %v3930_v14  ;;  %3403 = vmatpush3.bf16.msra.mxu0 %v3944_v21 }
  0x8c   :  { %3404 = vmatprep.subr.bf16.mxu0 %v3945_v22 }
  0x8f   :  { %3405 = vmatpush3.bf16.msra.mxu0 %v3945_v22 }
  0x90   :  { %3406 = vmatprep.subr.bf16.mxu0 %v3946_v54 }
  0x92   :  { %3359 = vmatmul.mubr.bf16.gmra.mrb[12].mxu0 %v3931_v15 }
  0x93   :  { %3407 = vmatpush3.bf16.msra.mxu0 %v3946_v54 }
  0x94   :  { %3408 = vmatprep.subr.bf16.mxu0 %v3947_v55 }
  0x97   :  { %3409 = vmatpush3.bf16.msra.mxu0 %v3947_v55 }
 0x14d   :  { %v3348_v23 = vpop.f32.mrb[0].mxu0 }
 0x14e   :  { %v278_v24 = vpop.f32.mrb[1].mxu0 }
 0x14f   :  { %v3349_v25 = vpop.f32.mrb[2].mxu0 }
 0x150   :  { %v342_v26 = vpack.c.bf16 %v3349_v25, %v3348_v23  ;;  %v281_v27 = vpop.f32.mrb[3].mxu0 }
 0x151   :  { %v341_v28 = vpack.c.bf16 %v281_v27, %v278_v24 }
 0x153   :  { %3362 = vmatprep.subr.bf16.mxu1 %v341_v28 }
 0x154   :  { %3363 = vmatpush3.bf16.msra.mxu1 %v341_v28 }
 0x155   :  { %v3352_v29 = vpop.f32.mrb[4].mxu0  ;;  %3364 = vmatprep.subr.bf16.mxu1 %v342_v26 }
 0x156   :  { %v294_v30 = vpop.f32.mrb[5].mxu0 }
 0x157   :  { %v3353_v31 = vpop.f32.mrb[6].mxu0 }
 0x158   :  { %v344_v32 = vpack.c.bf16 %v3353_v31, %v3352_v29  ;;  %v297_v33 = vpop.f32.mrb[7].mxu0  ;;  %3365 = vmatpush3.bf16.msra.mxu1 %v342_v26 }
 0x159   :  { %v343_v34 = vpack.c.bf16 %v297_v33, %v294_v30 }
 0x15b   :  { %3366 = vmatprep.subr.bf16.mxu1 %v343_v34 }
 0x15c   :  { %3367 = vmatpush3.bf16.msra.mxu1 %v343_v34 }
 0x15d   :  { %v3356_v35 = vpop.f32.mrb[8].mxu0  ;;  %3368 = vmatprep.subr.bf16.mxu1 %v344_v32 }
 0x15e   :  { %v310_v36 = vpop.f32.mrb[9].mxu0 }
 0x15f   :  { %v3357_v37 = vpop.f32.mrb[10].mxu0 }
 0x160   :  { %v346_v38 = vpack.c.bf16 %v3357_v37, %v3356_v35  ;;  %v313_v39 = vpop.f32.mrb[11].mxu0  ;;  %3369 = vmatpush3.bf16.msra.mxu1 %v344_v32 }
 0x161   :  { %v345_v40 = vpack.c.bf16 %v313_v39, %v310_v36 }
 0x163   :  { %3370 = vmatprep.subr.bf16.mxu1 %v345_v40 }
 0x164   :  { %3371 = vmatpush3.bf16.msra.mxu1 %v345_v40 }
 0x165   :  { %v3360_v41 = vpop.f32.mrb[12].mxu0  ;;  %3372 = vmatprep.subr.bf16.mxu1 %v346_v38 }
 0x166   :  { %v326_v42 = vpop.f32.mrb[13].mxu0 }
 0x167   :  { %v3361_v43 = vpop.f32.mrb[14].mxu0 }
 0x168   :  { %v348_v44 = vpack.c.bf16 %v3361_v43, %v3360_v41  ;;  %v329_v45 = vpop.f32.mrb[15].mxu0  ;;  %3373 = vmatpush3.bf16.msra.mxu1 %v346_v38 }
 0x169   :  { %v347_v46 = vpack.c.bf16 %v329_v45, %v326_v42 }
 0x16b   :  { %3374 = vmatprep.subr.bf16.mxu1 %v347_v46 }
 0x16c   :  { %3375 = vmatpush3.bf16.msra.mxu1 %v347_v46 }
 0x16d   :  { %3376 = vmatprep.subr.bf16.mxu1 %v348_v44 }
 0x170   :  { %3377 = vmatpush3.bf16.msra.mxu1 %v348_v44 }
 0x173   :  { %3379 = vmatmul.mubr.bf16.vlgmr.msra.gmra.mrb[0].mxu1 %v4306_v47 }
 0x174   :  { %3382 = vmatprep.mubr.bf16.mxu1 %v4308_v48 }
 0x17b   :  { %3383 = vmatmul.mubr.bf16.gmra.mrb[4].mxu1 %v4312_v49 }
 0x17c   :  { %3386 = vmatprep.mubr.bf16.mxu1 %v4314_v50 }
 0x183   :  { %3387 = vmatmul.mubr.bf16.gmra.mrb[8].mxu1 %v4318_v51 }
 0x184   :  { %3390 = vmatprep.mubr.bf16.mxu1 %v4320_v52 }
 0x18b   :  { %3391 = vmatmul.mubr.bf16.gmra.mrb[12].mxu1 %v4324_v53 }
 0x18c   :  { %3442 = vmatprep.mubr.bf16.mxu1 %v4303_v16 }
 0x246   :  { %v3380_v57 = vpop.f32.mrb[0].mxu1 }
 0x247   :  { %v446_v58 = vadd.f32 %v3380_v57, %v2955_v56  ;;  %v437_v59 = vpop.f32.mrb[1].mxu1 }
 0x248   :  { %v438_v60 = vadd.f32 %v2955_v56, %v437_v59  ;;  %v3381_v61 = vpop.f32.mrb[2].mxu1  ;;  %v3949_v59 = vld [vmem:[#allocation8 + $0x48] sm:$0xff]  }
 0x249   :  { %v449_v62 = vadd.f32 %v3381_v61, %v2955_v56  ;;  %v440_v63 = vpop.f32.mrb[3].mxu1  ;;  %v502_v1 = vmax.f32 %v446_v58, 0.0  ;;  %v3948_v58 = vld [vmem:[#allocation8 + $0x40] sm:$0xff]   ;;  %v3951_v61 = vld [vmem:[#allocation8 + $0x58] sm:$0xff]  }
 0x24a   :  { %v441_v0 = vadd.f32 %v2955_v56, %v440_v63  ;;  %v500_v3 = vmax.f32 %v438_v60, 0.0  ;;  %3458 = vmatprep.subr.bf16.mxu0 %v3948_v58  ;;  %v3950_v60 = vld [vmem:[#allocation8 + $0x50] sm:$0xff]  }
 0x24b   :  { %v503_v2 = vmax.f32 %v449_v62, 0.0  ;;  %v3953_v62 = vld [vmem:[#allocation8 + $0x68] sm:$0xff]  }
 0x24c   :  { %v501_v4 = vmax.f32 %v441_v0, 0.0 }
 0x24d   :  { %v517_v5 = vpack.c.bf16 %v503_v2, %v502_v1 }
 0x24e   :  { %v516_v6 = vpack.c.bf16 %v501_v4, %v500_v3  ;;  %v3384_v7 = vpop.f32.mrb[4].mxu1 }
 0x24f   :  { %v462_v8 = vadd.f32 %v3384_v7, %v2955_v56  ;;  %v453_v9 = vpop.f32.mrb[5].mxu1 }
 0x250   :  { %v454_v10 = vadd.f32 %v2955_v56, %v453_v9  ;;  %v3385_v11 = vpop.f32.mrb[6].mxu1  ;;  %3410 = vmatprep.mubr.bf16.mxu0 %v516_v6 }
 0x251   :  { %v465_v12 = vadd.f32 %v3385_v11, %v2955_v56  ;;  %v456_v13 = vpop.f32.mrb[7].mxu1  ;;  %3411 = vmatmul.mubr.bf16.vlgmr.msra.gmra.mrb[16].mxu0 %v517_v5  ;;  %v506_v15 = vmax.f32 %v462_v8, 0.0 }
 0x252   :  { %v457_v14 = vadd.f32 %v2955_v56, %v456_v13  ;;  %v504_v18 = vmax.f32 %v454_v10, 0.0  ;;  %3459 = vmatpush3.bf16.msra.mxu0 %v3948_v58 }
 0x253   :  { %v507_v17 = vmax.f32 %v465_v12, 0.0  ;;  %3460 = vmatprep.subr.bf16.mxu0 %v3949_v59 }
 0x254   :  { %v505_v19 = vmax.f32 %v457_v14, 0.0 }
 0x255   :  { %v519_v20 = vpack.c.bf16 %v507_v17, %v506_v15 }
 0x256   :  { %v518_v21 = vpack.c.bf16 %v505_v19, %v504_v18  ;;  %v3388_v22 = vpop.f32.mrb[8].mxu1  ;;  %3461 = vmatpush3.bf16.msra.mxu0 %v3949_v59 }
 0x257   :  { %v478_v23 = vadd.f32 %v3388_v22, %v2955_v56  ;;  %v469_v24 = vpop.f32.mrb[9].mxu1  ;;  %3462 = vmatprep.subr.bf16.mxu0 %v3950_v60 }
 0x258   :  { %v470_v25 = vadd.f32 %v2955_v56, %v469_v24  ;;  %v3389_v26 = vpop.f32.mrb[10].mxu1  ;;  %3414 = vmatprep.mubr.bf16.mxu0 %v518_v21  ;;  %v3954_v24 = vld [vmem:[#allocation8 + $0x70] sm:$0xff]  }
 0x259   :  { %v481_v27 = vadd.f32 %v3389_v26, %v2955_v56  ;;  %v472_v28 = vpop.f32.mrb[11].mxu1  ;;  %3415 = vmatmul.mubr.bf16.gmra.mrb[20].mxu0 %v519_v20  ;;  %v510_v30 = vmax.f32 %v478_v23, 0.0  ;;  %v2972_v26 = vld [vmem:[%s4444_s5] ss:$0 sm:$0xff] }
 0x25a   :  { %v473_v29 = vadd.f32 %v2955_v56, %v472_v28  ;;  %v508_v32 = vmax.f32 %v470_v25, 0.0  ;;  %3463 = vmatpush3.bf16.msra.mxu0 %v3950_v60  ;;  %v3955_v25 = vld [vmem:[#allocation8 + $0x78] sm:$0xff]  }
 0x25b   :  { %v511_v31 = vmax.f32 %v481_v27, 0.0  ;;  %3464 = vmatprep.subr.bf16.mxu0 %v3951_v61 }
 0x25c   :  { %v509_v33 = vmax.f32 %v473_v29, 0.0 }
 0x25d   :  { %v521_v34 = vpack.c.bf16 %v511_v31, %v510_v30 }
 0x25e   :  { %v520_v35 = vpack.c.bf16 %v509_v33, %v508_v32  ;;  %v3392_v36 = vpop.f32.mrb[12].mxu1  ;;  %3465 = vmatpush3.bf16.msra.mxu0 %v3951_v61 }
 0x25f   :  { %v494_v37 = vadd.f32 %v3392_v36, %v2955_v56  ;;  %v485_v38 = vpop.f32.mrb[13].mxu1 }
 0x260   :  { %v486_v39 = vadd.f32 %v2955_v56, %v485_v38  ;;  %v3393_v40 = vpop.f32.mrb[14].mxu1  ;;  %3418 = vmatprep.mubr.bf16.mxu0 %v520_v35 }
 0x261   :  { %v497_v41 = vadd.f32 %v3393_v40, %v2955_v56  ;;  %v488_v42 = vpop.f32.mrb[15].mxu1  ;;  %3419 = vmatmul.mubr.bf16.gmra.mrb[24].mxu0 %v521_v34  ;;  %v514_v44 = vmax.f32 %v494_v37, 0.0 }
 0x262   :  { %v489_v43 = vadd.f32 %v2955_v56, %v488_v42  ;;  %v512_v46 = vmax.f32 %v486_v39, 0.0  ;;  %v3952_v56 = vld [vmem:[#allocation8 + $0x60] sm:$0xff]  }
 0x263   :  { %v515_v45 = vmax.f32 %v497_v41, 0.0  ;;  %3466 = vmatprep.subr.bf16.mxu0 %v3952_v56 }
 0x264   :  { %v513_v54 = vmax.f32 %v489_v43, 0.0  ;;  %3467 = vmatpush3.bf16.msra.mxu0 %v3952_v56 }
 0x265   :  { %v523_v55 = vpack.c.bf16 %v515_v45, %v514_v44  ;;  %3468 = vmatprep.subr.bf16.mxu0 %v3953_v62 }
 0x266   :  { %v522_v57 = vpack.c.bf16 %v513_v54, %v512_v46 }
 0x268   :  { %3422 = vmatprep.mubr.bf16.mxu0 %v522_v57  ;;  %3469 = vmatpush3.bf16.msra.mxu0 %v3953_v62 }
 0x269   :  { %3423 = vmatmul.mubr.bf16.gmra.mrb[28].mxu0 %v523_v55  ;;  %3470 = vmatprep.subr.bf16.mxu0 %v3954_v24 }
 0x26c   :  { %3471 = vmatpush3.bf16.msra.mxu0 %v3954_v24 }
 0x26d   :  { %3472 = vmatprep.subr.bf16.mxu0 %v3955_v25 }
 0x270   :  { %3473 = vmatpush3.bf16.msra.mxu0 %v3955_v25 }
 0x324   :  { %v3412_v63 = vpop.f32.mrb[16].mxu0 }
 0x325   :  { %v623_v0 = vpop.f32.mrb[17].mxu0 }
 0x326   :  { %v3413_v1 = vpop.f32.mrb[18].mxu0 }
 0x327   :  { %v687_v2 = vpack.c.bf16 %v3413_v1, %v3412_v63  ;;  %v626_v3 = vpop.f32.mrb[19].mxu0 }
 0x328   :  { %v686_v4 = vpack.c.bf16 %v626_v3, %v623_v0 }
 0x32a   :  { %3426 = vmatprep.subr.bf16.mxu1 %v686_v4 }
 0x32b   :  { %3427 = vmatpush3.bf16.msra.mxu1 %v686_v4 }
 0x32c   :  { %v3416_v5 = vpop.f32.mrb[20].mxu0  ;;  %3428 = vmatprep.subr.bf16.mxu1 %v687_v2 }
 0x32d   :  { %v639_v6 = vpop.f32.mrb[21].mxu0 }
 0x32e   :  { %v3417_v7 = vpop.f32.mrb[22].mxu0 }
 0x32f   :  { %v689_v8 = vpack.c.bf16 %v3417_v7, %v3416_v5  ;;  %v642_v9 = vpop.f32.mrb[23].mxu0  ;;  %3429 = vmatpush3.bf16.msra.mxu1 %v687_v2 }
 0x330   :  { %v688_v10 = vpack.c.bf16 %v642_v9, %v639_v6 }
 0x332   :  { %3430 = vmatprep.subr.bf16.mxu1 %v688_v10 }
 0x333   :  { %3431 = vmatpush3.bf16.msra.mxu1 %v688_v10 }
 0x334   :  { %v3420_v11 = vpop.f32.mrb[24].mxu0  ;;  %3432 = vmatprep.subr.bf16.mxu1 %v689_v8 }
 0x335   :  { %v655_v12 = vpop.f32.mrb[25].mxu0 }
 0x336   :  { %v3421_v13 = vpop.f32.mrb[26].mxu0 }
 0x337   :  { %v691_v14 = vpack.c.bf16 %v3421_v13, %v3420_v11  ;;  %v658_v15 = vpop.f32.mrb[27].mxu0  ;;  %3433 = vmatpush3.bf16.msra.mxu1 %v689_v8 }
 0x338   :  { %v690_v17 = vpack.c.bf16 %v658_v15, %v655_v12 }
 0x33a   :  { %3434 = vmatprep.subr.bf16.mxu1 %v690_v17 }
 0x33b   :  { %3435 = vmatpush3.bf16.msra.mxu1 %v690_v17 }
 0x33c   :  { %v3424_v18 = vpop.f32.mrb[28].mxu0  ;;  %3436 = vmatprep.subr.bf16.mxu1 %v691_v14 }
 0x33d   :  { %v671_v19 = vpop.f32.mrb[29].mxu0 }
 0x33e   :  { %v3425_v20 = vpop.f32.mrb[30].mxu0 }
 0x33f   :  { %v693_v21 = vpack.c.bf16 %v3425_v20, %v3424_v18  ;;  %v674_v22 = vpop.f32.mrb[31].mxu0  ;;  %3437 = vmatpush3.bf16.msra.mxu1 %v691_v14 }
 0x340   :  { %v692_v23 = vpack.c.bf16 %v674_v22, %v671_v19 }
 0x342   :  { %3438 = vmatprep.subr.bf16.mxu1 %v692_v23 }
 0x343   :  { %3439 = vmatpush3.bf16.msra.mxu1 %v692_v23 }
 0x344   :  { %3440 = vmatprep.subr.bf16.mxu1 %v693_v21 }
 0x347   :  { %3441 = vmatpush3.bf16.msra.mxu1 %v693_v21 }
 0x34a   :  { %3443 = vmatmul.mubr.bf16.vlgmr.msra.gmra.mrb[16].mxu1 %v4306_v47 }
 0x34b   :  { %3446 = vmatprep.mubr.bf16.mxu1 %v4308_v48 }
 0x352   :  { %3447 = vmatmul.mubr.bf16.gmra.mrb[20].mxu1 %v4312_v49 }
 0x353   :  { %3450 = vmatprep.mubr.bf16.mxu1 %v4314_v50 }
 0x35a   :  { %3451 = vmatmul.mubr.bf16.gmra.mrb[24].mxu1 %v4318_v51 }
 0x35b   :  { %3454 = vmatprep.mubr.bf16.mxu1 %v4320_v52 }
 0x362   :  { %3455 = vmatmul.mubr.bf16.gmra.mrb[28].mxu1 %v4324_v53 }
 0x363   :  { %3506 = vmatprep.mubr.bf16.mxu1 %v4303_v16 }
 0x41d   :  { %v3444_v27 = vpop.f32.mrb[16].mxu1 }
 0x41e   :  { %v743_v28 = vadd.f32 %v3444_v27, %v2972_v26  ;;  %v734_v29 = vpop.f32.mrb[17].mxu1 }
 0x41f   :  { %v735_v30 = vadd.f32 %v2972_v26, %v734_v29  ;;  %v3445_v31 = vpop.f32.mrb[18].mxu1  ;;  %v3957_v29 = vld [vmem:[#allocation8 + $0x88] sm:$0xff]  }
 0x420   :  { %v746_v32 = vadd.f32 %v3445_v31, %v2972_v26  ;;  %v737_v33 = vpop.f32.mrb[19].mxu1  ;;  %v799_v35 = vmax.f32 %v743_v28, 0.0  ;;  %v3956_v28 = vld [vmem:[#allocation8 + $0x80] sm:$0xff]   ;;  %v3959_v31 = vld [vmem:[#allocation8 + $0x98] sm:$0xff]  }
 0x421   :  { %v738_v34 = vadd.f32 %v2972_v26, %v737_v33  ;;  %v797_v37 = vmax.f32 %v735_v30, 0.0  ;;  %3522 = vmatprep.subr.bf16.mxu0 %v3956_v28  ;;  %v3958_v30 = vld [vmem:[#allocation8 + $0x90] sm:$0xff]  }
 0x422   :  { %v800_v36 = vmax.f32 %v746_v32, 0.0  ;;  %v3961_v32 = vld [vmem:[#allocation8 + $0xa8] sm:$0xff]  }
 0x423   :  { %v798_v38 = vmax.f32 %v738_v34, 0.0 }
 0x424   :  { %v814_v39 = vpack.c.bf16 %v800_v36, %v799_v35 }
 0x425   :  { %v813_v40 = vpack.c.bf16 %v798_v38, %v797_v37  ;;  %v3448_v41 = vpop.f32.mrb[20].mxu1 }
 0x426   :  { %v759_v42 = vadd.f32 %v3448_v41, %v2972_v26  ;;  %v750_v43 = vpop.f32.mrb[21].mxu1 }
 0x427   :  { %v751_v44 = vadd.f32 %v2972_v26, %v750_v43  ;;  %v3449_v45 = vpop.f32.mrb[22].mxu1  ;;  %3474 = vmatprep.mubr.bf16.mxu0 %v813_v40 }
 0x428   :  { %v762_v46 = vadd.f32 %v3449_v45, %v2972_v26  ;;  %v753_v54 = vpop.f32.mrb[23].mxu1  ;;  %3475 = vmatmul.mubr.bf16.vlgmr.msra.gmra.mrb[32].mxu0 %v814_v39  ;;  %v803_v57 = vmax.f32 %v759_v42, 0.0 }
 0x429   :  { %v754_v55 = vadd.f32 %v2972_v26, %v753_v54  ;;  %v801_v59 = vmax.f32 %v751_v44, 0.0  ;;  %3523 = vmatpush3.bf16.msra.mxu0 %v3956_v28 }
 0x42a   :  { %v804_v58 = vmax.f32 %v762_v46, 0.0  ;;  %3524 = vmatprep.subr.bf16.mxu0 %v3957_v29 }
 0x42b   :  { %v802_v60 = vmax.f32 %v754_v55, 0.0 }
 0x42c   :  { %v816_v61 = vpack.c.bf16 %v804_v58, %v803_v57 }
 0x42d   :  { %v815_v56 = vpack.c.bf16 %v802_v60, %v801_v59  ;;  %v3452_v62 = vpop.f32.mrb[24].mxu1  ;;  %3525 = vmatpush3.bf16.msra.mxu0 %v3957_v29 }
 0x42e   :  { %v775_v63 = vadd.f32 %v3452_v62, %v2972_v26  ;;  %v766_v0 = vpop.f32.mrb[25].mxu1  ;;  %3526 = vmatprep.subr.bf16.mxu0 %v3958_v30 }
 0x42f   :  { %v767_v1 = vadd.f32 %v2972_v26, %v766_v0  ;;  %v3453_v2 = vpop.f32.mrb[26].mxu1  ;;  %3478 = vmatprep.mubr.bf16.mxu0 %v815_v56  ;;  %v3962_v0 = vld [vmem:[#allocation8 + $0xb0] sm:$0xff]  }
 0x430   :  { %v778_v3 = vadd.f32 %v3453_v2, %v2972_v26  ;;  %v769_v4 = vpop.f32.mrb[27].mxu1  ;;  %3479 = vmatmul.mubr.bf16.gmra.mrb[36].mxu0 %v816_v61  ;;  %v807_v6 = vmax.f32 %v775_v63, 0.0  ;;  %v2982_v2 = vld [vmem:[%s4444_s5 + $0x1] ss:$0 sm:$0xff] }
 0x431   :  { %v770_v5 = vadd.f32 %v2972_v26, %v769_v4  ;;  %v805_v8 = vmax.f32 %v767_v1, 0.0  ;;  %3527 = vmatpush3.bf16.msra.mxu0 %v3958_v30  ;;  %v3963_v1 = vld [vmem:[#allocation8 + $0xb8] sm:$0xff]  }
 0x432   :  { %v808_v7 = vmax.f32 %v778_v3, 0.0  ;;  %3528 = vmatprep.subr.bf16.mxu0 %v3959_v31 }
 0x433   :  { %v806_v9 = vmax.f32 %v770_v5, 0.0 }
 0x434   :  { %v818_v10 = vpack.c.bf16 %v808_v7, %v807_v6 }
 0x435   :  { %v817_v11 = vpack.c.bf16 %v806_v9, %v805_v8  ;;  %v3456_v12 = vpop.f32.mrb[28].mxu1  ;;  %3529 = vmatpush3.bf16.msra.mxu0 %v3959_v31 }
 0x436   :  { %v791_v13 = vadd.f32 %v3456_v12, %v2972_v26  ;;  %v782_v14 = vpop.f32.mrb[29].mxu1 }
 0x437   :  { %v783_v15 = vadd.f32 %v2972_v26, %v782_v14  ;;  %v3457_v17 = vpop.f32.mrb[30].mxu1  ;;  %3482 = vmatprep.mubr.bf16.mxu0 %v817_v11 }
 0x438   :  { %v794_v18 = vadd.f32 %v3457_v17, %v2972_v26  ;;  %v785_v19 = vpop.f32.mrb[31].mxu1  ;;  %3483 = vmatmul.mubr.bf16.gmra.mrb[40].mxu0 %v818_v10  ;;  %v811_v21 = vmax.f32 %v791_v13, 0.0 }
 0x439   :  { %v786_v20 = vadd.f32 %v2972_v26, %v785_v19  ;;  %v809_v23 = vmax.f32 %v783_v15, 0.0  ;;  %v3960_v26 = vld [vmem:[#allocation8 + $0xa0] sm:$0xff]  }
 0x43a   :  { %v812_v22 = vmax.f32 %v794_v18, 0.0  ;;  %3530 = vmatprep.subr.bf16.mxu0 %v3960_v26 }
 0x43b   :  { %v810_v24 = vmax.f32 %v786_v20, 0.0  ;;  %3531 = vmatpush3.bf16.msra.mxu0 %v3960_v26 }
 0x43c   :  { %v820_v25 = vpack.c.bf16 %v812_v22, %v811_v21  ;;  %3532 = vmatprep.subr.bf16.mxu0 %v3961_v32 }
 0x43d   :  { %v819_v27 = vpack.c.bf16 %v810_v24, %v809_v23 }
 0x43f   :  { %3486 = vmatprep.mubr.bf16.mxu0 %v819_v27  ;;  %3533 = vmatpush3.bf16.msra.mxu0 %v3961_v32 }
 0x440   :  { %3487 = vmatmul.mubr.bf16.gmra.mrb[44].mxu0 %v820_v25  ;;  %3534 = vmatprep.subr.bf16.mxu0 %v3962_v0 }
 0x443   :  { %3535 = vmatpush3.bf16.msra.mxu0 %v3962_v0 }
 0x444   :  { %3536 = vmatprep.subr.bf16.mxu0 %v3963_v1 }
 0x447   :  { %3537 = vmatpush3.bf16.msra.mxu0 %v3963_v1 }
 0x4fb   :  { %v3476_v33 = vpop.f32.mrb[32].mxu0 }
 0x4fc   :  { %v922_v34 = vpop.f32.mrb[33].mxu0 }
 0x4fd   :  { %v3477_v35 = vpop.f32.mrb[34].mxu0 }
 0x4fe   :  { %v986_v36 = vpack.c.bf16 %v3477_v35, %v3476_v33  ;;  %v925_v37 = vpop.f32.mrb[35].mxu0 }
 0x4ff   :  { %v985_v38 = vpack.c.bf16 %v925_v37, %v922_v34 }
 0x501   :  { %3490 = vmatprep.subr.bf16.mxu1 %v985_v38 }
 0x502   :  { %3491 = vmatpush3.bf16.msra.mxu1 %v985_v38 }
 0x503   :  { %v3480_v39 = vpop.f32.mrb[36].mxu0  ;;  %3492 = vmatprep.subr.bf16.mxu1 %v986_v36 }
 0x504   :  { %v938_v40 = vpop.f32.mrb[37].mxu0 }
 0x505   :  { %v3481_v41 = vpop.f32.mrb[38].mxu0 }
 0x506   :  { %v988_v42 = vpack.c.bf16 %v3481_v41, %v3480_v39  ;;  %v941_v43 = vpop.f32.mrb[39].mxu0  ;;  %3493 = vmatpush3.bf16.msra.mxu1 %v986_v36 }
 0x507   :  { %v987_v44 = vpack.c.bf16 %v941_v43, %v938_v40 }
 0x509   :  { %3494 = vmatprep.subr.bf16.mxu1 %v987_v44 }
 0x50a   :  { %3495 = vmatpush3.bf16.msra.mxu1 %v987_v44 }
 0x50b   :  { %v3484_v45 = vpop.f32.mrb[40].mxu0  ;;  %3496 = vmatprep.subr.bf16.mxu1 %v988_v42 }
 0x50c   :  { %v954_v46 = vpop.f32.mrb[41].mxu0 }
 0x50d   :  { %v3485_v54 = vpop.f32.mrb[42].mxu0 }
 0x50e   :  { %v990_v55 = vpack.c.bf16 %v3485_v54, %v3484_v45  ;;  %v957_v57 = vpop.f32.mrb[43].mxu0  ;;  %3497 = vmatpush3.bf16.msra.mxu1 %v988_v42 }
 0x50f   :  { %v989_v58 = vpack.c.bf16 %v957_v57, %v954_v46 }
 0x511   :  { %3498 = vmatprep.subr.bf16.mxu1 %v989_v58 }
 0x512   :  { %3499 = vmatpush3.bf16.msra.mxu1 %v989_v58 }
 0x513   :  { %v3488_v59 = vpop.f32.mrb[44].mxu0  ;;  %3500 = vmatprep.subr.bf16.mxu1 %v990_v55 }
 0x514   :  { %v970_v60 = vpop.f32.mrb[45].mxu0 }
 0x515   :  { %v3489_v61 = vpop.f32.mrb[46].mxu0 }
 0x516   :  { %v992_v56 = vpack.c.bf16 %v3489_v61, %v3488_v59  ;;  %v973_v62 = vpop.f32.mrb[47].mxu0  ;;  %3501 = vmatpush3.bf16.msra.mxu1 %v990_v55 }
 0x517   :  { %v991_v63 = vpack.c.bf16 %v973_v62, %v970_v60 }
 0x519   :  { %3502 = vmatprep.subr.bf16.mxu1 %v991_v63 }
 0x51a   :  { %3503 = vmatpush3.bf16.msra.mxu1 %v991_v63 }
 0x51b   :  { %3504 = vmatprep.subr.bf16.mxu1 %v992_v56 }
 0x51e   :  { %3505 = vmatpush3.bf16.msra.mxu1 %v992_v56 }
 0x521   :  { %3507 = vmatmul.mubr.bf16.vlgmr.msra.gmra.mrb[32].mxu1 %v4306_v47 }
 0x522   :  { %3510 = vmatprep.mubr.bf16.mxu1 %v4308_v48 }
 0x529   :  { %3511 = vmatmul.mubr.bf16.gmra.mrb[36].mxu1 %v4312_v49 }
 0x52a   :  { %3514 = vmatprep.mubr.bf16.mxu1 %v4314_v50 }
 0x531   :  { %3515 = vmatmul.mubr.bf16.gmra.mrb[40].mxu1 %v4318_v51 }
 0x532   :  { %3518 = vmatprep.mubr.bf16.mxu1 %v4320_v52 }
 0x539   :  { %3519 = vmatmul.mubr.bf16.gmra.mrb[44].mxu1 %v4324_v53 }
 0x53a   :  { %3570 = vmatprep.mubr.bf16.mxu1 %v4303_v16 }
 0x5f4   :  { %v3508_v3 = vpop.f32.mrb[32].mxu1 }
 0x5f5   :  { %v1042_v4 = vadd.f32 %v3508_v3, %v2982_v2  ;;  %v1033_v5 = vpop.f32.mrb[33].mxu1 }
 0x5f6   :  { %v1034_v6 = vadd.f32 %v2982_v2, %v1033_v5  ;;  %v3509_v7 = vpop.f32.mrb[34].mxu1  ;;  %v3965_v5 = vld [vmem:[#allocation8 + $0xc8] sm:$0xff]  }
 0x5f7   :  { %v1045_v8 = vadd.f32 %v3509_v7, %v2982_v2  ;;  %v1036_v9 = vpop.f32.mrb[35].mxu1  ;;  %v1098_v11 = vmax.f32 %v1042_v4, 0.0  ;;  %v3964_v4 = vld [vmem:[#allocation8 + $0xc0] sm:$0xff]   ;;  %v3967_v7 = vld [vmem:[#allocation8 + $0xd8] sm:$0xff]  }
 0x5f8   :  { %v1037_v10 = vadd.f32 %v2982_v2, %v1036_v9  ;;  %v1096_v13 = vmax.f32 %v1034_v6, 0.0  ;;  %3586 = vmatprep.subr.bf16.mxu0 %v3964_v4  ;;  %v3966_v6 = vld [vmem:[#allocation8 + $0xd0] sm:$0xff]  }
 0x5f9   :  { %v1099_v12 = vmax.f32 %v1045_v8, 0.0  ;;  %v3969_v8 = vld [vmem:[#allocation8 + $0xe8] sm:$0xff]  }
 0x5fa   :  { %v1097_v14 = vmax.f32 %v1037_v10, 0.0 }
 0x5fb   :  { %v1113_v15 = vpack.c.bf16 %v1099_v12, %v1098_v11 }
 0x5fc   :  { %v1112_v17 = vpack.c.bf16 %v1097_v14, %v1096_v13  ;;  %v3512_v18 = vpop.f32.mrb[36].mxu1 }
 0x5fd   :  { %v1058_v19 = vadd.f32 %v3512_v18, %v2982_v2  ;;  %v1049_v20 = vpop.f32.mrb[37].mxu1 }
 0x5fe   :  { %v1050_v21 = vadd.f32 %v2982_v2, %v1049_v20  ;;  %v3513_v22 = vpop.f32.mrb[38].mxu1  ;;  %3538 = vmatprep.mubr.bf16.mxu0 %v1112_v17 }
 0x5ff   :  { %v1061_v23 = vadd.f32 %v3513_v22, %v2982_v2  ;;  %v1052_v24 = vpop.f32.mrb[39].mxu1  ;;  %3539 = vmatmul.mubr.bf16.vlgmr.msra.gmra.mrb[48].mxu0 %v1113_v15  ;;  %v1102_v27 = vmax.f32 %v1058_v19, 0.0 }
 0x600   :  { %v1053_v25 = vadd.f32 %v2982_v2, %v1052_v24  ;;  %v1100_v29 = vmax.f32 %v1050_v21, 0.0  ;;  %3587 = vmatpush3.bf16.msra.mxu0 %v3964_v4 }
 0x601   :  { %v1103_v28 = vmax.f32 %v1061_v23, 0.0  ;;  %3588 = vmatprep.subr.bf16.mxu0 %v3965_v5 }
 0x602   :  { %v1101_v30 = vmax.f32 %v1053_v25, 0.0 }
 0x603   :  { %v1115_v31 = vpack.c.bf16 %v1103_v28, %v1102_v27 }
 0x604   :  { %v1114_v26 = vpack.c.bf16 %v1101_v30, %v1100_v29  ;;  %v3516_v32 = vpop.f32.mrb[40].mxu1  ;;  %3589 = vmatpush3.bf16.msra.mxu0 %v3965_v5 }
 0x605   :  { %v1074_v33 = vadd.f32 %v3516_v32, %v2982_v2  ;;  %v1065_v34 = vpop.f32.mrb[41].mxu1  ;;  %3590 = vmatprep.subr.bf16.mxu0 %v3966_v6 }
 0x606   :  { %v1066_v35 = vadd.f32 %v2982_v2, %v1065_v34  ;;  %v3517_v36 = vpop.f32.mrb[42].mxu1  ;;  %3542 = vmatprep.mubr.bf16.mxu0 %v1114_v26  ;;  %v3970_v34 = vld [vmem:[#allocation8 + $0xf0] sm:$0xff]  }
 0x607   :  { %v1077_v37 = vadd.f32 %v3517_v36, %v2982_v2  ;;  %v1068_v38 = vpop.f32.mrb[43].mxu1  ;;  %3543 = vmatmul.mubr.bf16.gmra.mrb[52].mxu0 %v1115_v31  ;;  %v1106_v40 = vmax.f32 %v1074_v33, 0.0 }
 0x608   :  { %v1069_v39 = vadd.f32 %v2982_v2, %v1068_v38  ;;  %v1104_v42 = vmax.f32 %v1066_v35, 0.0  ;;  %3591 = vmatpush3.bf16.msra.mxu0 %v3966_v6  ;;  %v3971_v35 = vld [vmem:[#allocation8 + $0xf8] sm:$0xff]  }
 0x609   :  { %v1107_v41 = vmax.f32 %v1077_v37, 0.0  ;;  %3592 = vmatprep.subr.bf16.mxu0 %v3967_v7 }
 0x60a   :  { %v1105_v43 = vmax.f32 %v1069_v39, 0.0 }
 0x60b   :  { %v1117_v44 = vpack.c.bf16 %v1107_v41, %v1106_v40 }
 0x60c   :  { %v1116_v45 = vpack.c.bf16 %v1105_v43, %v1104_v42  ;;  %v3520_v46 = vpop.f32.mrb[44].mxu1  ;;  %3593 = vmatpush3.bf16.msra.mxu0 %v3967_v7 }
 0x60d   :  { %v1090_v54 = vadd.f32 %v3520_v46, %v2982_v2  ;;  %v1081_v55 = vpop.f32.mrb[45].mxu1 }
 0x60e   :  { %v1082_v57 = vadd.f32 %v2982_v2, %v1081_v55  ;;  %v3521_v58 = vpop.f32.mrb[46].mxu1  ;;  %3546 = vmatprep.mubr.bf16.mxu0 %v1116_v45 }
 0x60f   :  { %v1093_v59 = vadd.f32 %v3521_v58, %v2982_v2  ;;  %v1084_v60 = vpop.f32.mrb[47].mxu1  ;;  %3547 = vmatmul.mubr.bf16.gmra.mrb[56].mxu0 %v1117_v44  ;;  %v1110_v56 = vmax.f32 %v1090_v54, 0.0 }
 0x610   :  { %v1085_v61 = vadd.f32 %v2982_v2, %v1084_v60  ;;  %v1108_v63 = vmax.f32 %v1082_v57, 0.0  ;;  %v3968_v2 = vld [vmem:[#allocation8 + $0xe0] sm:$0xff]  }
 0x611   :  { %v1111_v62 = vmax.f32 %v1093_v59, 0.0  ;;  %3594 = vmatprep.subr.bf16.mxu0 %v3968_v2 }
 0x612   :  { %v1109_v0 = vmax.f32 %v1085_v61, 0.0  ;;  %3595 = vmatpush3.bf16.msra.mxu0 %v3968_v2 }
 0x613   :  { %v1119_v1 = vpack.c.bf16 %v1111_v62, %v1110_v56  ;;  %3596 = vmatprep.subr.bf16.mxu0 %v3969_v8 }
 0x614   :  { %v1118_v3 = vpack.c.bf16 %v1109_v0, %v1108_v63 }
 0x616   :  { %3550 = vmatprep.mubr.bf16.mxu0 %v1118_v3  ;;  %3597 = vmatpush3.bf16.msra.mxu0 %v3969_v8 }
 0x617   :  { %3551 = vmatmul.mubr.bf16.gmra.mrb[60].mxu0 %v1119_v1  ;;  %3598 = vmatprep.subr.bf16.mxu0 %v3970_v34 }
 0x61a   :  { %3599 = vmatpush3.bf16.msra.mxu0 %v3970_v34  ;;  %v3977_v34 = vld [vmem:[#allocation8 + $0x128] sm:$0xff]  }
 0x61b   :  { %3600 = vmatprep.subr.bf16.mxu0 %v3971_v35 }
 0x61e   :  { %3601 = vmatpush3.bf16.msra.mxu0 %v3971_v35 }
 0x6d2   :  { %v3540_v9 = vpop.f32.mrb[48].mxu0 }
 0x6d3   :  { %v1221_v10 = vpop.f32.mrb[49].mxu0 }
 0x6d4   :  { %v3541_v11 = vpop.f32.mrb[50].mxu0 }
 0x6d5   :  { %v1285_v12 = vpack.c.bf16 %v3541_v11, %v3540_v9  ;;  %v1224_v13 = vpop.f32.mrb[51].mxu0 }
 0x6d6   :  { %v1284_v14 = vpack.c.bf16 %v1224_v13, %v1221_v10 }
 0x6d8   :  { %3554 = vmatprep.subr.bf16.mxu1 %v1284_v14 }
 0x6d9   :  { %3555 = vmatpush3.bf16.msra.mxu1 %v1284_v14 }
 0x6da   :  { %v3544_v15 = vpop.f32.mrb[52].mxu0  ;;  %3556 = vmatprep.subr.bf16.mxu1 %v1285_v12 }
 0x6db   :  { %v1237_v17 = vpop.f32.mrb[53].mxu0 }
 0x6dc   :  { %v3545_v18 = vpop.f32.mrb[54].mxu0 }
 0x6dd   :  { %v1287_v19 = vpack.c.bf16 %v3545_v18, %v3544_v15  ;;  %v1240_v20 = vpop.f32.mrb[55].mxu0  ;;  %3557 = vmatpush3.bf16.msra.mxu1 %v1285_v12 }
 0x6de   :  { %v1286_v21 = vpack.c.bf16 %v1240_v20, %v1237_v17 }
 0x6e0   :  { %3558 = vmatprep.subr.bf16.mxu1 %v1286_v21 }
 0x6e1   :  { %3559 = vmatpush3.bf16.msra.mxu1 %v1286_v21 }
 0x6e2   :  { %v3548_v22 = vpop.f32.mrb[56].mxu0  ;;  %3560 = vmatprep.subr.bf16.mxu1 %v1287_v19 }
 0x6e3   :  { %v1253_v23 = vpop.f32.mrb[57].mxu0 }
 0x6e4   :  { %v3549_v24 = vpop.f32.mrb[58].mxu0 }
 0x6e5   :  { %v1289_v25 = vpack.c.bf16 %v3549_v24, %v3548_v22  ;;  %v1256_v27 = vpop.f32.mrb[59].mxu0  ;;  %3561 = vmatpush3.bf16.msra.mxu1 %v1287_v19 }
 0x6e6   :  { %v1288_v28 = vpack.c.bf16 %v1256_v27, %v1253_v23 }
 0x6e8   :  { %3562 = vmatprep.subr.bf16.mxu1 %v1288_v28 }
 0x6e9   :  { %3563 = vmatpush3.bf16.msra.mxu1 %v1288_v28 }
 0x6ea   :  { %v3552_v29 = vpop.f32.mrb[60].mxu0  ;;  %3564 = vmatprep.subr.bf16.mxu1 %v1289_v25 }
 0x6eb   :  { %v1269_v30 = vpop.f32.mrb[61].mxu0 }
 0x6ec   :  { %v3553_v31 = vpop.f32.mrb[62].mxu0 }
 0x6ed   :  { %v1291_v26 = vpack.c.bf16 %v3553_v31, %v3552_v29  ;;  %v1272_v32 = vpop.f32.mrb[63].mxu0  ;;  %3565 = vmatpush3.bf16.msra.mxu1 %v1289_v25  ;;  %v3973_v31 = vld [vmem:[#allocation8 + $0x108] sm:$0xff]  }
 0x6ee   :  { %v1290_v33 = vpack.c.bf16 %v1272_v32, %v1269_v30  ;;  %v3972_v30 = vld [vmem:[#allocation8 + $0x100] sm:$0xff]   ;;  %v3975_v32 = vld [vmem:[#allocation8 + $0x118] sm:$0xff]  }
 0x6ef   :  { %3650 = vmatprep.subr.bf16.mxu0 %v3972_v30 }
 0x6f0   :  { %3566 = vmatprep.subr.bf16.mxu1 %v1290_v33 }
 0x6f1   :  { %3567 = vmatpush3.bf16.msra.mxu1 %v1290_v33  ;;  %v3976_v33 = vld [vmem:[#allocation8 + $0x120] sm:$0xff]  }
 0x6f2   :  { %3568 = vmatprep.subr.bf16.mxu1 %v1291_v26 }
 0x6f5   :  { %3569 = vmatpush3.bf16.msra.mxu1 %v1291_v26  ;;  %v3974_v26 = vld [vmem:[#allocation8 + $0x110] sm:$0xff]  }
 0x6f8   :  { %3571 = vmatmul.mubr.bf16.vlgmr.msra.gmra.mrb[48].mxu1 %v4306_v47  ;;  %v2992_v47 = vld [vmem:[%s4444_s5 + $0x2] ss:$0 sm:$0xff] }
 0x6f9   :  { %3574 = vmatprep.mubr.bf16.mxu1 %v4308_v48 }
 0x700   :  { %3575 = vmatmul.mubr.bf16.gmra.mrb[52].mxu1 %v4312_v49 }
 0x701   :  { %3578 = vmatprep.mubr.bf16.mxu1 %v4314_v50 }
 0x708   :  { %3579 = vmatmul.mubr.bf16.gmra.mrb[56].mxu1 %v4318_v51 }
 0x709   :  { %3582 = vmatprep.mubr.bf16.mxu1 %v4320_v52 }
 0x710   :  { %3583 = vmatmul.mubr.bf16.gmra.mrb[60].mxu1 %v4324_v53 }
 0x711   :  { %3634 = vmatprep.mubr.bf16.mxu1 %v4303_v16 }
 0x7cb   :  { %v3572_v48 = vpop.f32.mrb[48].mxu1 }
 0x7cc   :  { %v1341_v49 = vadd.f32 %v3572_v48, %v2992_v47  ;;  %v1332_v50 = vpop.f32.mrb[49].mxu1 }
 0x7cd   :  { %v1333_v51 = vadd.f32 %v2992_v47, %v1332_v50  ;;  %v3573_v36 = vpop.f32.mrb[50].mxu1 }
 0x7ce   :  { %v1344_v52 = vadd.f32 %v3573_v36, %v2992_v47  ;;  %v1335_v37 = vpop.f32.mrb[51].mxu1  ;;  %v1397_v38 = vmax.f32 %v1341_v49, 0.0 }
 0x7cf   :  { %v1336_v53 = vadd.f32 %v2992_v47, %v1335_v37  ;;  %v1395_v39 = vmax.f32 %v1333_v51, 0.0 }
 0x7d0   :  { %v1398_v16 = vmax.f32 %v1344_v52, 0.0 }
 0x7d1   :  { %v1396_v40 = vmax.f32 %v1336_v53, 0.0 }
 0x7d2   :  { %v1412_v41 = vpack.c.bf16 %v1398_v16, %v1397_v38 }
 0x7d3   :  { %v1411_v42 = vpack.c.bf16 %v1396_v40, %v1395_v39  ;;  %v3576_v43 = vpop.f32.mrb[52].mxu1 }
 0x7d4   :  { %v1357_v44 = vadd.f32 %v3576_v43, %v2992_v47  ;;  %v1348_v45 = vpop.f32.mrb[53].mxu1 }
 0x7d5   :  { %v1349_v46 = vadd.f32 %v2992_v47, %v1348_v45  ;;  %v3577_v54 = vpop.f32.mrb[54].mxu1  ;;  %3602 = vmatprep.mubr.bf16.mxu0 %v1411_v42 }
 0x7d6   :  { %v1360_v55 = vadd.f32 %v3577_v54, %v2992_v47  ;;  %v1351_v57 = vpop.f32.mrb[55].mxu1  ;;  %3603 = vmatmul.mubr.bf16.vlgmr.msra.gmra.mrb[64].mxu0 %v1412_v41  ;;  %v1401_v59 = vmax.f32 %v1357_v44, 0.0 }
 0x7d7   :  { %v1352_v58 = vadd.f32 %v2992_v47, %v1351_v57  ;;  %v1399_v61 = vmax.f32 %v1349_v46, 0.0  ;;  %3651 = vmatpush3.bf16.msra.mxu0 %v3972_v30 }
 0x7d8   :  { %v1402_v60 = vmax.f32 %v1360_v55, 0.0  ;;  %3652 = vmatprep.subr.bf16.mxu0 %v3973_v31 }
 0x7d9   :  { %v1400_v56 = vmax.f32 %v1352_v58, 0.0 }
 0x7da   :  { %v1414_v62 = vpack.c.bf16 %v1402_v60, %v1401_v59  ;;  %v4364_v59 = vld [vmem:[#allocation2 + $0x8] sm:$0xff]   ;;  %v4367_v60 = vld [vmem:[#allocation2 + $0x10] sm:$0xff]  }
 0x7db   :  { %v1413_v63 = vpack.c.bf16 %v1400_v56, %v1399_v61  ;;  %v3580_v0 = vpop.f32.mrb[56].mxu1  ;;  %3653 = vmatpush3.bf16.msra.mxu0 %v3973_v31  ;;  %v4370_v61 = vld [vmem:[#allocation2 + $0x18] sm:$0xff]   ;;  %v4373_v56 = vld [vmem:[#allocation2 + $0x20] sm:$0xff]  }
 0x7dc   :  { %v1373_v1 = vadd.f32 %v3580_v0, %v2992_v47  ;;  %v1364_v3 = vpop.f32.mrb[57].mxu1  ;;  %3654 = vmatprep.subr.bf16.mxu0 %v3974_v26  ;;  %v4382_v0 = vld [vmem:[#allocation2 + $0x38] sm:$0xff]  }
 0x7dd   :  { %v1365_v4 = vadd.f32 %v2992_v47, %v1364_v3  ;;  %v3581_v5 = vpop.f32.mrb[58].mxu1  ;;  %3606 = vmatprep.mubr.bf16.mxu0 %v1413_v63  ;;  %v4379_v63 = vld [vmem:[#allocation2 + $0x30] sm:$0xff]  }
 0x7de   :  { %v1376_v6 = vadd.f32 %v3581_v5, %v2992_v47  ;;  %v1367_v7 = vpop.f32.mrb[59].mxu1  ;;  %3607 = vmatmul.mubr.bf16.gmra.mrb[68].mxu0 %v1414_v62  ;;  %v1405_v8 = vmax.f32 %v1373_v1, 0.0  ;;  %v4376_v62 = vld [vmem:[#allocation2 + $0x28] sm:$0xff]   ;;  %v4385_v1 = vld [vmem:[#allocation2] sm:$0xff]   ;;  %v3978_v3 = vld [vmem:[#allocation8 + $0x130] sm:$0xff]  }
 0x7df   :  { %v1368_v2 = vadd.f32 %v2992_v47, %v1367_v7  ;;  %v1403_v10 = vmax.f32 %v1365_v4, 0.0  ;;  %3655 = vmatpush3.bf16.msra.mxu0 %v3974_v26  ;;  %v3979_v4 = vld [vmem:[#allocation8 + $0x138] sm:$0xff]   ;;  %v3002_v5 = vld [vmem:[%s4444_s5 + $0x3] ss:$0 sm:$0xff] }
 0x7e0   :  { %v1406_v9 = vmax.f32 %v1376_v6, 0.0  ;;  %3656 = vmatprep.subr.bf16.mxu0 %v3975_v32 }
 0x7e1   :  { %v1404_v11 = vmax.f32 %v1368_v2, 0.0 }
 0x7e2   :  { %v1416_v12 = vpack.c.bf16 %v1406_v9, %v1405_v8 }
 0x7e3   :  { %v1415_v13 = vpack.c.bf16 %v1404_v11, %v1403_v10  ;;  %v3584_v14 = vpop.f32.mrb[60].mxu1  ;;  %3657 = vmatpush3.bf16.msra.mxu0 %v3975_v32 }
 0x7e4   :  { %v1389_v15 = vadd.f32 %v3584_v14, %v2992_v47  ;;  %v1380_v17 = vpop.f32.mrb[61].mxu1  ;;  %3658 = vmatprep.subr.bf16.mxu0 %v3976_v33 }
 0x7e5   :  { %v1381_v18 = vadd.f32 %v2992_v47, %v1380_v17  ;;  %v3585_v19 = vpop.f32.mrb[62].mxu1  ;;  %3610 = vmatprep.mubr.bf16.mxu0 %v1415_v13 }
 0x7e6   :  { %v1392_v20 = vadd.f32 %v3585_v19, %v2992_v47  ;;  %v1383_v21 = vpop.f32.mrb[63].mxu1  ;;  %3611 = vmatmul.mubr.bf16.gmra.mrb[72].mxu0 %v1416_v12  ;;  %v1409_v23 = vmax.f32 %v1389_v15, 0.0 }
 0x7e7   :  { %v1384_v22 = vadd.f32 %v2992_v47, %v1383_v21  ;;  %v1407_v25 = vmax.f32 %v1381_v18, 0.0  ;;  %3659 = vmatpush3.bf16.msra.mxu0 %v3976_v33 }
 0x7e8   :  { %v1410_v24 = vmax.f32 %v1392_v20, 0.0  ;;  %3660 = vmatprep.subr.bf16.mxu0 %v3977_v34 }
 0x7e9   :  { %v1408_v27 = vmax.f32 %v1384_v22, 0.0 }
 0x7ea   :  { %v1418_v28 = vpack.c.bf16 %v1410_v24, %v1409_v23 }
 0x7eb   :  { %v1417_v29 = vpack.c.bf16 %v1408_v27, %v1407_v25  ;;  %3661 = vmatpush3.bf16.msra.mxu0 %v3977_v34 }
 0x7ec   :  { %3662 = vmatprep.subr.bf16.mxu0 %v3978_v3 }
 0x7ed   :  { %3614 = vmatprep.mubr.bf16.mxu0 %v1417_v29 }
 0x7ee   :  { %3615 = vmatmul.mubr.bf16.gmra.mrb[76].mxu0 %v1418_v28 }
 0x7ef   :  { %3663 = vmatpush3.bf16.msra.mxu0 %v3978_v3 }
 0x7f0   :  { %3664 = vmatprep.subr.bf16.mxu0 %v3979_v4 }
 0x7f3   :  { %3665 = vmatpush3.bf16.msra.mxu0 %v3979_v4 }
 0x8a9   :  { %v3604_v35 = vpop.f32.mrb[64].mxu0 }
 0x8aa   :  { %v1520_v47 = vpop.f32.mrb[65].mxu0 }
 0x8ab   :  { %v3605_v48 = vpop.f32.mrb[66].mxu0 }
 0x8ac   :  { %v1584_v49 = vpack.c.bf16 %v3605_v48, %v3604_v35  ;;  %v1523_v50 = vpop.f32.mrb[67].mxu0 }
 0x8ad   :  { %v1583_v51 = vpack.c.bf16 %v1523_v50, %v1520_v47 }
 0x8af   :  { %3618 = vmatprep.subr.bf16.mxu1 %v1583_v51 }
 0x8b0   :  { %3619 = vmatpush3.bf16.msra.mxu1 %v1583_v51 }
 0x8b1   :  { %v3608_v36 = vpop.f32.mrb[68].mxu0  ;;  %3620 = vmatprep.subr.bf16.mxu1 %v1584_v49 }
 0x8b2   :  { %v1536_v52 = vpop.f32.mrb[69].mxu0 }
 0x8b3   :  { %v3609_v37 = vpop.f32.mrb[70].mxu0 }
 0x8b4   :  { %v1586_v53 = vpack.c.bf16 %v3609_v37, %v3608_v36  ;;  %v1539_v38 = vpop.f32.mrb[71].mxu0  ;;  %3621 = vmatpush3.bf16.msra.mxu1 %v1584_v49 }
 0x8b5   :  { %v1585_v16 = vpack.c.bf16 %v1539_v38, %v1536_v52 }
 0x8b7   :  { %3622 = vmatprep.subr.bf16.mxu1 %v1585_v16 }
 0x8b8   :  { %3623 = vmatpush3.bf16.msra.mxu1 %v1585_v16 }
 0x8b9   :  { %v3612_v39 = vpop.f32.mrb[72].mxu0  ;;  %3624 = vmatprep.subr.bf16.mxu1 %v1586_v53 }
 0x8ba   :  { %v1552_v40 = vpop.f32.mrb[73].mxu0 }
 0x8bb   :  { %v3613_v41 = vpop.f32.mrb[74].mxu0 }
 0x8bc   :  { %v1588_v42 = vpack.c.bf16 %v3613_v41, %v3612_v39  ;;  %v1555_v43 = vpop.f32.mrb[75].mxu0  ;;  %3625 = vmatpush3.bf16.msra.mxu1 %v1586_v53 }
 0x8bd   :  { %v1587_v44 = vpack.c.bf16 %v1555_v43, %v1552_v40 }
 0x8bf   :  { %3626 = vmatprep.subr.bf16.mxu1 %v1587_v44 }
 0x8c0   :  { %3627 = vmatpush3.bf16.msra.mxu1 %v1587_v44 }
 0x8c1   :  { %v3616_v45 = vpop.f32.mrb[76].mxu0  ;;  %3628 = vmatprep.subr.bf16.mxu1 %v1588_v42 }
 0x8c2   :  { %v1568_v46 = vpop.f32.mrb[77].mxu0 }
 0x8c3   :  { %v3617_v54 = vpop.f32.mrb[78].mxu0 }
 0x8c4   :  { %v1590_v55 = vpack.c.bf16 %v3617_v54, %v3616_v45  ;;  %v1571_v57 = vpop.f32.mrb[79].mxu0  ;;  %3629 = vmatpush3.bf16.msra.mxu1 %v1588_v42 }
 0x8c5   :  { %v1589_v58 = vpack.c.bf16 %v1571_v57, %v1568_v46 }
 0x8c7   :  { %3630 = vmatprep.subr.bf16.mxu1 %v1589_v58 }
 0x8c8   :  { %3631 = vmatpush3.bf16.msra.mxu1 %v1589_v58 }
 0x8c9   :  { %3632 = vmatprep.subr.bf16.mxu1 %v1590_v55 }
 0x8cc   :  { %3633 = vmatpush3.bf16.msra.mxu1 %v1590_v55 }
 0x8cf   :  { %3635 = vmatmul.mubr.bf16.vlgmr.msra.gmra.mrb[64].mxu1 %v4364_v59 }
 0x8d0   :  { %3638 = vmatprep.mubr.bf16.mxu1 %v4367_v60 }
 0x8d7   :  { %3639 = vmatmul.mubr.bf16.gmra.mrb[68].mxu1 %v4370_v61 }
 0x8d8   :  { %3642 = vmatprep.mubr.bf16.mxu1 %v4373_v56 }
 0x8df   :  { %3643 = vmatmul.mubr.bf16.gmra.mrb[72].mxu1 %v4376_v62 }
 0x8e0   :  { %3646 = vmatprep.mubr.bf16.mxu1 %v4379_v63 }
 0x8e7   :  { %3647 = vmatmul.mubr.bf16.gmra.mrb[76].mxu1 %v4382_v0 }
 0x8e8   :  { %3698 = vmatprep.mubr.bf16.mxu1 %v4385_v1 }
 0x9a2   :  { %v3636_v6 = vpop.f32.mrb[64].mxu1 }
 0x9a3   :  { %v1640_v7 = vadd.f32 %v3636_v6, %v3002_v5  ;;  %v1631_v2 = vpop.f32.mrb[65].mxu1 }
 0x9a4   :  { %v1632_v8 = vadd.f32 %v3002_v5, %v1631_v2  ;;  %v3637_v9 = vpop.f32.mrb[66].mxu1  ;;  %v3981_v2 = vld [vmem:[#allocation8 + $0x148] sm:$0xff]  }
 0x9a5   :  { %v1643_v10 = vadd.f32 %v3637_v9, %v3002_v5  ;;  %v1634_v11 = vpop.f32.mrb[67].mxu1  ;;  %v1696_v13 = vmax.f32 %v1640_v7, 0.0  ;;  %v3980_v7 = vld [vmem:[#allocation8 + $0x140] sm:$0xff]   ;;  %v3983_v9 = vld [vmem:[#allocation8 + $0x158] sm:$0xff]  }
 0x9a6   :  { %v1635_v12 = vadd.f32 %v3002_v5, %v1634_v11  ;;  %v1694_v15 = vmax.f32 %v1632_v8, 0.0  ;;  %3714 = vmatprep.subr.bf16.mxu0 %v3980_v7  ;;  %v3982_v8 = vld [vmem:[#allocation8 + $0x150] sm:$0xff]  }
 0x9a7   :  { %v1697_v14 = vmax.f32 %v1643_v10, 0.0  ;;  %v3985_v10 = vld [vmem:[#allocation8 + $0x168] sm:$0xff]  }
 0x9a8   :  { %v1695_v17 = vmax.f32 %v1635_v12, 0.0 }
 0x9a9   :  { %v1711_v18 = vpack.c.bf16 %v1697_v14, %v1696_v13 }
 0x9aa   :  { %v1710_v19 = vpack.c.bf16 %v1695_v17, %v1694_v15  ;;  %v3640_v20 = vpop.f32.mrb[68].mxu1 }
 0x9ab   :  { %v1656_v21 = vadd.f32 %v3640_v20, %v3002_v5  ;;  %v1647_v22 = vpop.f32.mrb[69].mxu1 }
 0x9ac   :  { %v1648_v23 = vadd.f32 %v3002_v5, %v1647_v22  ;;  %v3641_v24 = vpop.f32.mrb[70].mxu1  ;;  %3666 = vmatprep.mubr.bf16.mxu0 %v1710_v19 }
 0x9ad   :  { %v1659_v25 = vadd.f32 %v3641_v24, %v3002_v5  ;;  %v1650_v27 = vpop.f32.mrb[71].mxu1  ;;  %3667 = vmatmul.mubr.bf16.vlgmr.msra.gmra.mrb[80].mxu0 %v1711_v18  ;;  %v1700_v29 = vmax.f32 %v1656_v21, 0.0 }
 0x9ae   :  { %v1651_v28 = vadd.f32 %v3002_v5, %v1650_v27  ;;  %v1698_v31 = vmax.f32 %v1648_v23, 0.0  ;;  %3715 = vmatpush3.bf16.msra.mxu0 %v3980_v7 }
 0x9af   :  { %v1701_v30 = vmax.f32 %v1659_v25, 0.0  ;;  %3716 = vmatprep.subr.bf16.mxu0 %v3981_v2 }
 0x9b0   :  { %v1699_v26 = vmax.f32 %v1651_v28, 0.0 }
 0x9b1   :  { %v1713_v32 = vpack.c.bf16 %v1701_v30, %v1700_v29 }
 0x9b2   :  { %v1712_v33 = vpack.c.bf16 %v1699_v26, %v1698_v31  ;;  %v3644_v34 = vpop.f32.mrb[72].mxu1  ;;  %3717 = vmatpush3.bf16.msra.mxu0 %v3981_v2 }
 0x9b3   :  { %v1672_v35 = vadd.f32 %v3644_v34, %v3002_v5  ;;  %v1663_v47 = vpop.f32.mrb[73].mxu1  ;;  %3718 = vmatprep.subr.bf16.mxu0 %v3982_v8 }
 0x9b4   :  { %v1664_v48 = vadd.f32 %v3002_v5, %v1663_v47  ;;  %v3645_v49 = vpop.f32.mrb[74].mxu1  ;;  %3670 = vmatprep.mubr.bf16.mxu0 %v1712_v33  ;;  %v3986_v47 = vld [vmem:[#allocation8 + $0x170] sm:$0xff]  }
 0x9b5   :  { %v1675_v50 = vadd.f32 %v3645_v49, %v3002_v5  ;;  %v1666_v51 = vpop.f32.mrb[75].mxu1  ;;  %3671 = vmatmul.mubr.bf16.gmra.mrb[84].mxu0 %v1713_v32  ;;  %v1704_v52 = vmax.f32 %v1672_v35, 0.0  ;;  %v3012_v49 = vld [vmem:[%s4444_s5 + $0x4] ss:$0 sm:$0xff] }
 0x9b6   :  { %v1667_v36 = vadd.f32 %v3002_v5, %v1666_v51  ;;  %v1702_v53 = vmax.f32 %v1664_v48, 0.0  ;;  %3719 = vmatpush3.bf16.msra.mxu0 %v3982_v8  ;;  %v3987_v48 = vld [vmem:[#allocation8 + $0x178] sm:$0xff]  }
 0x9b7   :  { %v1705_v37 = vmax.f32 %v1675_v50, 0.0  ;;  %3720 = vmatprep.subr.bf16.mxu0 %v3983_v9 }
 0x9b8   :  { %v1703_v38 = vmax.f32 %v1667_v36, 0.0 }
 0x9b9   :  { %v1715_v16 = vpack.c.bf16 %v1705_v37, %v1704_v52 }
 0x9ba   :  { %v1714_v39 = vpack.c.bf16 %v1703_v38, %v1702_v53  ;;  %v3648_v40 = vpop.f32.mrb[76].mxu1  ;;  %3721 = vmatpush3.bf16.msra.mxu0 %v3983_v9 }
 0x9bb   :  { %v1688_v41 = vadd.f32 %v3648_v40, %v3002_v5  ;;  %v1679_v42 = vpop.f32.mrb[77].mxu1 }
 0x9bc   :  { %v1680_v43 = vadd.f32 %v3002_v5, %v1679_v42  ;;  %v3649_v44 = vpop.f32.mrb[78].mxu1  ;;  %3674 = vmatprep.mubr.bf16.mxu0 %v1714_v39 }
 0x9bd   :  { %v1691_v45 = vadd.f32 %v3649_v44, %v3002_v5  ;;  %v1682_v46 = vpop.f32.mrb[79].mxu1  ;;  %3675 = vmatmul.mubr.bf16.gmra.mrb[88].mxu0 %v1715_v16  ;;  %v1708_v55 = vmax.f32 %v1688_v41, 0.0 }
 0x9be   :  { %v1683_v54 = vadd.f32 %v3002_v5, %v1682_v46  ;;  %v1706_v58 = vmax.f32 %v1680_v43, 0.0  ;;  %v3984_v5 = vld [vmem:[#allocation8 + $0x160] sm:$0xff]  }
 0x9bf   :  { %v1709_v57 = vmax.f32 %v1691_v45, 0.0  ;;  %3722 = vmatprep.subr.bf16.mxu0 %v3984_v5 }
 0x9c0   :  { %v1707_v3 = vmax.f32 %v1683_v54, 0.0  ;;  %3723 = vmatpush3.bf16.msra.mxu0 %v3984_v5 }
 0x9c1   :  { %v1717_v4 = vpack.c.bf16 %v1709_v57, %v1708_v55  ;;  %3724 = vmatprep.subr.bf16.mxu0 %v3985_v10 }
 0x9c2   :  { %v1716_v6 = vpack.c.bf16 %v1707_v3, %v1706_v58 }
 0x9c4   :  { %3678 = vmatprep.mubr.bf16.mxu0 %v1716_v6  ;;  %3725 = vmatpush3.bf16.msra.mxu0 %v3985_v10 }
 0x9c5   :  { %3679 = vmatmul.mubr.bf16.gmra.mrb[92].mxu0 %v1717_v4  ;;  %3726 = vmatprep.subr.bf16.mxu0 %v3986_v47 }
 0x9c8   :  { %3727 = vmatpush3.bf16.msra.mxu0 %v3986_v47 }
 0x9c9   :  { %3728 = vmatprep.subr.bf16.mxu0 %v3987_v48 }
 0x9cc   :  { %3729 = vmatpush3.bf16.msra.mxu0 %v3987_v48 }
 0xa80   :  { %v3668_v11 = vpop.f32.mrb[80].mxu0 }
 0xa81   :  { %v1819_v12 = vpop.f32.mrb[81].mxu0 }
 0xa82   :  { %v3669_v13 = vpop.f32.mrb[82].mxu0 }
 0xa83   :  { %v1883_v14 = vpack.c.bf16 %v3669_v13, %v3668_v11  ;;  %v1822_v15 = vpop.f32.mrb[83].mxu0 }
 0xa84   :  { %v1882_v17 = vpack.c.bf16 %v1822_v15, %v1819_v12 }
 0xa86   :  { %3682 = vmatprep.subr.bf16.mxu1 %v1882_v17 }
 0xa87   :  { %3683 = vmatpush3.bf16.msra.mxu1 %v1882_v17 }
 0xa88   :  { %v3672_v18 = vpop.f32.mrb[84].mxu0  ;;  %3684 = vmatprep.subr.bf16.mxu1 %v1883_v14 }
 0xa89   :  { %v1835_v19 = vpop.f32.mrb[85].mxu0 }
 0xa8a   :  { %v3673_v20 = vpop.f32.mrb[86].mxu0 }
 0xa8b   :  { %v1885_v21 = vpack.c.bf16 %v3673_v20, %v3672_v18  ;;  %v1838_v22 = vpop.f32.mrb[87].mxu0  ;;  %3685 = vmatpush3.bf16.msra.mxu1 %v1883_v14 }
 0xa8c   :  { %v1884_v23 = vpack.c.bf16 %v1838_v22, %v1835_v19 }
 0xa8e   :  { %3686 = vmatprep.subr.bf16.mxu1 %v1884_v23 }
 0xa8f   :  { %3687 = vmatpush3.bf16.msra.mxu1 %v1884_v23 }
 0xa90   :  { %v3676_v24 = vpop.f32.mrb[88].mxu0  ;;  %3688 = vmatprep.subr.bf16.mxu1 %v1885_v21 }
 0xa91   :  { %v1851_v25 = vpop.f32.mrb[89].mxu0 }
 0xa92   :  { %v3677_v27 = vpop.f32.mrb[90].mxu0 }
 0xa93   :  { %v1887_v28 = vpack.c.bf16 %v3677_v27, %v3676_v24  ;;  %v1854_v29 = vpop.f32.mrb[91].mxu0  ;;  %3689 = vmatpush3.bf16.msra.mxu1 %v1885_v21 }
 0xa94   :  { %v1886_v30 = vpack.c.bf16 %v1854_v29, %v1851_v25 }
 0xa96   :  { %3690 = vmatprep.subr.bf16.mxu1 %v1886_v30 }
 0xa97   :  { %3691 = vmatpush3.bf16.msra.mxu1 %v1886_v30 }
 0xa98   :  { %v3680_v31 = vpop.f32.mrb[92].mxu0  ;;  %3692 = vmatprep.subr.bf16.mxu1 %v1887_v28 }
 0xa99   :  { %v1867_v26 = vpop.f32.mrb[93].mxu0 }
 0xa9a   :  { %v3681_v32 = vpop.f32.mrb[94].mxu0 }
 0xa9b   :  { %v1889_v33 = vpack.c.bf16 %v3681_v32, %v3680_v31  ;;  %v1870_v34 = vpop.f32.mrb[95].mxu0  ;;  %3693 = vmatpush3.bf16.msra.mxu1 %v1887_v28 }
 0xa9c   :  { %v1888_v35 = vpack.c.bf16 %v1870_v34, %v1867_v26 }
 0xa9e   :  { %3694 = vmatprep.subr.bf16.mxu1 %v1888_v35 }
 0xa9f   :  { %3695 = vmatpush3.bf16.msra.mxu1 %v1888_v35 }
 0xaa0   :  { %3696 = vmatprep.subr.bf16.mxu1 %v1889_v33 }
 0xaa3   :  { %3697 = vmatpush3.bf16.msra.mxu1 %v1889_v33 }
 0xaa6   :  { %3699 = vmatmul.mubr.bf16.vlgmr.msra.gmra.mrb[80].mxu1 %v4364_v59 }
 0xaa7   :  { %3702 = vmatprep.mubr.bf16.mxu1 %v4367_v60 }
 0xaae   :  { %3703 = vmatmul.mubr.bf16.gmra.mrb[84].mxu1 %v4370_v61 }
 0xaaf   :  { %3706 = vmatprep.mubr.bf16.mxu1 %v4373_v56 }
 0xab6   :  { %3707 = vmatmul.mubr.bf16.gmra.mrb[88].mxu1 %v4376_v62 }
 0xab7   :  { %3710 = vmatprep.mubr.bf16.mxu1 %v4379_v63 }
 0xabe   :  { %3711 = vmatmul.mubr.bf16.gmra.mrb[92].mxu1 %v4382_v0 }
 0xabf   :  { %3762 = vmatprep.mubr.bf16.mxu1 %v4385_v1 }
 0xb79   :  { %v3700_v50 = vpop.f32.mrb[80].mxu1 }
 0xb7a   :  { %v1939_v51 = vadd.f32 %v3700_v50, %v3012_v49  ;;  %v1930_v36 = vpop.f32.mrb[81].mxu1 }
 0xb7b   :  { %v1931_v52 = vadd.f32 %v3012_v49, %v1930_v36  ;;  %v3701_v37 = vpop.f32.mrb[82].mxu1  ;;  %v3989_v36 = vld [vmem:[#allocation8 + $0x188] sm:$0xff]  }
 0xb7c   :  { %v1942_v53 = vadd.f32 %v3701_v37, %v3012_v49  ;;  %v1933_v38 = vpop.f32.mrb[83].mxu1  ;;  %v1995_v39 = vmax.f32 %v1939_v51, 0.0  ;;  %v3988_v51 = vld [vmem:[#allocation8 + $0x180] sm:$0xff]   ;;  %v3991_v37 = vld [vmem:[#allocation8 + $0x198] sm:$0xff]  }
 0xb7d   :  { %v1934_v16 = vadd.f32 %v3012_v49, %v1933_v38  ;;  %v1993_v41 = vmax.f32 %v1931_v52, 0.0  ;;  %3778 = vmatprep.subr.bf16.mxu0 %v3988_v51  ;;  %v3990_v52 = vld [vmem:[#allocation8 + $0x190] sm:$0xff]  }
 0xb7e   :  { %v1996_v40 = vmax.f32 %v1942_v53, 0.0  ;;  %v3993_v53 = vld [vmem:[#allocation8 + $0x1a8] sm:$0xff]  }
 0xb7f   :  { %v1994_v42 = vmax.f32 %v1934_v16, 0.0 }
 0xb80   :  { %v2010_v43 = vpack.c.bf16 %v1996_v40, %v1995_v39 }
 0xb81   :  { %v2009_v44 = vpack.c.bf16 %v1994_v42, %v1993_v41  ;;  %v3704_v45 = vpop.f32.mrb[84].mxu1 }
 0xb82   :  { %v1955_v46 = vadd.f32 %v3704_v45, %v3012_v49  ;;  %v1946_v54 = vpop.f32.mrb[85].mxu1 }
 0xb83   :  { %v1947_v55 = vadd.f32 %v3012_v49, %v1946_v54  ;;  %v3705_v57 = vpop.f32.mrb[86].mxu1  ;;  %3730 = vmatprep.mubr.bf16.mxu0 %v2009_v44 }
 0xb84   :  { %v1958_v58 = vadd.f32 %v3705_v57, %v3012_v49  ;;  %v1949_v3 = vpop.f32.mrb[87].mxu1  ;;  %3731 = vmatmul.mubr.bf16.vlgmr.msra.gmra.mrb[96].mxu0 %v2010_v43  ;;  %v1999_v6 = vmax.f32 %v1955_v46, 0.0 }
 0xb85   :  { %v1950_v4 = vadd.f32 %v3012_v49, %v1949_v3  ;;  %v1997_v2 = vmax.f32 %v1947_v55, 0.0  ;;  %3779 = vmatpush3.bf16.msra.mxu0 %v3988_v51 }
 0xb86   :  { %v2000_v7 = vmax.f32 %v1958_v58, 0.0  ;;  %3780 = vmatprep.subr.bf16.mxu0 %v3989_v36 }
 0xb87   :  { %v1998_v8 = vmax.f32 %v1950_v4, 0.0 }
 0xb88   :  { %v2012_v9 = vpack.c.bf16 %v2000_v7, %v1999_v6 }
 0xb89   :  { %v2011_v5 = vpack.c.bf16 %v1998_v8, %v1997_v2  ;;  %v3708_v10 = vpop.f32.mrb[88].mxu1  ;;  %3781 = vmatpush3.bf16.msra.mxu0 %v3989_v36 }
 0xb8a   :  { %v1971_v11 = vadd.f32 %v3708_v10, %v3012_v49  ;;  %v1962_v12 = vpop.f32.mrb[89].mxu1  ;;  %3782 = vmatprep.subr.bf16.mxu0 %v3990_v52 }
 0xb8b   :  { %v1963_v13 = vadd.f32 %v3012_v49, %v1962_v12  ;;  %v3709_v14 = vpop.f32.mrb[90].mxu1  ;;  %3734 = vmatprep.mubr.bf16.mxu0 %v2011_v5  ;;  %v3994_v12 = vld [vmem:[#allocation8 + $0x1b0] sm:$0xff]  }
 0xb8c   :  { %v1974_v15 = vadd.f32 %v3709_v14, %v3012_v49  ;;  %v1965_v17 = vpop.f32.mrb[91].mxu1  ;;  %3735 = vmatmul.mubr.bf16.gmra.mrb[100].mxu0 %v2012_v9  ;;  %v2003_v19 = vmax.f32 %v1971_v11, 0.0  ;;  %v3022_v14 = vld [vmem:[%s4444_s5 + $0x5] ss:$0 sm:$0xff] }
 0xb8d   :  { %v1966_v18 = vadd.f32 %v3012_v49, %v1965_v17  ;;  %v2001_v21 = vmax.f32 %v1963_v13, 0.0  ;;  %3783 = vmatpush3.bf16.msra.mxu0 %v3990_v52  ;;  %v3995_v13 = vld [vmem:[#allocation8 + $0x1b8] sm:$0xff]  }
 0xb8e   :  { %v2004_v20 = vmax.f32 %v1974_v15, 0.0  ;;  %3784 = vmatprep.subr.bf16.mxu0 %v3991_v37 }
 0xb8f   :  { %v2002_v22 = vmax.f32 %v1966_v18, 0.0 }
 0xb90   :  { %v2014_v23 = vpack.c.bf16 %v2004_v20, %v2003_v19 }
 0xb91   :  { %v2013_v24 = vpack.c.bf16 %v2002_v22, %v2001_v21  ;;  %v3712_v25 = vpop.f32.mrb[92].mxu1  ;;  %3785 = vmatpush3.bf16.msra.mxu0 %v3991_v37 }
 0xb92   :  { %v1987_v27 = vadd.f32 %v3712_v25, %v3012_v49  ;;  %v1978_v28 = vpop.f32.mrb[93].mxu1 }
 0xb93   :  { %v1979_v29 = vadd.f32 %v3012_v49, %v1978_v28  ;;  %v3713_v30 = vpop.f32.mrb[94].mxu1  ;;  %3738 = vmatprep.mubr.bf16.mxu0 %v2013_v24 }
 0xb94   :  { %v1990_v31 = vadd.f32 %v3713_v30, %v3012_v49  ;;  %v1981_v26 = vpop.f32.mrb[95].mxu1  ;;  %3739 = vmatmul.mubr.bf16.gmra.mrb[104].mxu0 %v2014_v23  ;;  %v2007_v33 = vmax.f32 %v1987_v27, 0.0 }
 0xb95   :  { %v1982_v32 = vadd.f32 %v3012_v49, %v1981_v26  ;;  %v2005_v35 = vmax.f32 %v1979_v29, 0.0  ;;  %v3992_v49 = vld [vmem:[#allocation8 + $0x1a0] sm:$0xff]  }
 0xb96   :  { %v2008_v34 = vmax.f32 %v1990_v31, 0.0  ;;  %3786 = vmatprep.subr.bf16.mxu0 %v3992_v49 }
 0xb97   :  { %v2006_v47 = vmax.f32 %v1982_v32, 0.0  ;;  %3787 = vmatpush3.bf16.msra.mxu0 %v3992_v49 }
 0xb98   :  { %v2016_v48 = vpack.c.bf16 %v2008_v34, %v2007_v33  ;;  %3788 = vmatprep.subr.bf16.mxu0 %v3993_v53 }
 0xb99   :  { %v2015_v50 = vpack.c.bf16 %v2006_v47, %v2005_v35 }
 0xb9b   :  { %3742 = vmatprep.mubr.bf16.mxu0 %v2015_v50  ;;  %3789 = vmatpush3.bf16.msra.mxu0 %v3993_v53 }
 0xb9c   :  { %3743 = vmatmul.mubr.bf16.gmra.mrb[108].mxu0 %v2016_v48  ;;  %3790 = vmatprep.subr.bf16.mxu0 %v3994_v12 }
 0xb9f   :  { %3791 = vmatpush3.bf16.msra.mxu0 %v3994_v12 }
 0xba0   :  { %3792 = vmatprep.subr.bf16.mxu0 %v3995_v13 }
 0xba3   :  { %3793 = vmatpush3.bf16.msra.mxu0 %v3995_v13 }
 0xc57   :  { %v3732_v38 = vpop.f32.mrb[96].mxu0 }
 0xc58   :  { %v2118_v16 = vpop.f32.mrb[97].mxu0 }
 0xc59   :  { %v3733_v39 = vpop.f32.mrb[98].mxu0 }
 0xc5a   :  { %v2182_v40 = vpack.c.bf16 %v3733_v39, %v3732_v38  ;;  %v2121_v41 = vpop.f32.mrb[99].mxu0 }
 0xc5b   :  { %v2181_v42 = vpack.c.bf16 %v2121_v41, %v2118_v16 }
 0xc5d   :  { %3746 = vmatprep.subr.bf16.mxu1 %v2181_v42 }
 0xc5e   :  { %3747 = vmatpush3.bf16.msra.mxu1 %v2181_v42 }
 0xc5f   :  { %v3736_v43 = vpop.f32.mrb[100].mxu0  ;;  %3748 = vmatprep.subr.bf16.mxu1 %v2182_v40 }
 0xc60   :  { %v2134_v44 = vpop.f32.mrb[101].mxu0 }
 0xc61   :  { %v3737_v45 = vpop.f32.mrb[102].mxu0 }
 0xc62   :  { %v2184_v46 = vpack.c.bf16 %v3737_v45, %v3736_v43  ;;  %v2137_v54 = vpop.f32.mrb[103].mxu0  ;;  %3749 = vmatpush3.bf16.msra.mxu1 %v2182_v40 }
 0xc63   :  { %v2183_v55 = vpack.c.bf16 %v2137_v54, %v2134_v44 }
 0xc65   :  { %3750 = vmatprep.subr.bf16.mxu1 %v2183_v55 }
 0xc66   :  { %3751 = vmatpush3.bf16.msra.mxu1 %v2183_v55 }
 0xc67   :  { %v3740_v57 = vpop.f32.mrb[104].mxu0  ;;  %3752 = vmatprep.subr.bf16.mxu1 %v2184_v46 }
 0xc68   :  { %v2150_v58 = vpop.f32.mrb[105].mxu0 }
 0xc69   :  { %v3741_v3 = vpop.f32.mrb[106].mxu0 }
 0xc6a   :  { %v2186_v4 = vpack.c.bf16 %v3741_v3, %v3740_v57  ;;  %v2153_v6 = vpop.f32.mrb[107].mxu0  ;;  %3753 = vmatpush3.bf16.msra.mxu1 %v2184_v46 }
 0xc6b   :  { %v2185_v7 = vpack.c.bf16 %v2153_v6, %v2150_v58 }
 0xc6d   :  { %3754 = vmatprep.subr.bf16.mxu1 %v2185_v7 }
 0xc6e   :  { %3755 = vmatpush3.bf16.msra.mxu1 %v2185_v7 }
 0xc6f   :  { %v3744_v2 = vpop.f32.mrb[108].mxu0  ;;  %3756 = vmatprep.subr.bf16.mxu1 %v2186_v4 }
 0xc70   :  { %v2166_v8 = vpop.f32.mrb[109].mxu0 }
 0xc71   :  { %v3745_v9 = vpop.f32.mrb[110].mxu0 }
 0xc72   :  { %v2188_v5 = vpack.c.bf16 %v3745_v9, %v3744_v2  ;;  %v2169_v10 = vpop.f32.mrb[111].mxu0  ;;  %3757 = vmatpush3.bf16.msra.mxu1 %v2186_v4 }
 0xc73   :  { %v2187_v11 = vpack.c.bf16 %v2169_v10, %v2166_v8 }
 0xc75   :  { %3758 = vmatprep.subr.bf16.mxu1 %v2187_v11 }
 0xc76   :  { %3759 = vmatpush3.bf16.msra.mxu1 %v2187_v11 }
 0xc77   :  { %3760 = vmatprep.subr.bf16.mxu1 %v2188_v5 }
 0xc7a   :  { %3761 = vmatpush3.bf16.msra.mxu1 %v2188_v5 }
 0xc7d   :  { %3763 = vmatmul.mubr.bf16.vlgmr.msra.gmra.mrb[96].mxu1 %v4364_v59 }
 0xc7e   :  { %3766 = vmatprep.mubr.bf16.mxu1 %v4367_v60 }
 0xc85   :  { %3767 = vmatmul.mubr.bf16.gmra.mrb[100].mxu1 %v4370_v61 }
 0xc86   :  { %3770 = vmatprep.mubr.bf16.mxu1 %v4373_v56 }
 0xc8d   :  { %3771 = vmatmul.mubr.bf16.gmra.mrb[104].mxu1 %v4376_v62 }
 0xc8e   :  { %3774 = vmatprep.mubr.bf16.mxu1 %v4379_v63 }
 0xc95   :  { %3775 = vmatmul.mubr.bf16.gmra.mrb[108].mxu1 %v4382_v0 }
 0xc96   :  { %3826 = vmatprep.mubr.bf16.mxu1 %v4385_v1 }
 0xd50   :  { %v3764_v15 = vpop.f32.mrb[96].mxu1 }
 0xd51   :  { %v2238_v17 = vadd.f32 %v3764_v15, %v3022_v14  ;;  %v2229_v18 = vpop.f32.mrb[97].mxu1 }
 0xd52   :  { %v2230_v19 = vadd.f32 %v3022_v14, %v2229_v18  ;;  %v3765_v20 = vpop.f32.mrb[98].mxu1  ;;  %v3997_v18 = vld [vmem:[#allocation10 + $0x8] sm:$0xff]  }
 0xd53   :  { %v2241_v21 = vadd.f32 %v3765_v20, %v3022_v14  ;;  %v2232_v22 = vpop.f32.mrb[99].mxu1  ;;  %v2294_v24 = vmax.f32 %v2238_v17, 0.0  ;;  %v3996_v17 = vld [vmem:[#allocation10] sm:$0xff]   ;;  %v3999_v20 = vld [vmem:[#allocation10 + $0x18] sm:$0xff]  }
 0xd54   :  { %v2233_v23 = vadd.f32 %v3022_v14, %v2232_v22  ;;  %v2292_v27 = vmax.f32 %v2230_v19, 0.0  ;;  %3842 = vmatprep.subr.bf16.mxu0 %v3996_v17  ;;  %v3998_v19 = vld [vmem:[#allocation10 + $0x10] sm:$0xff]  }
 0xd55   :  { %v2295_v25 = vmax.f32 %v2241_v21, 0.0  ;;  %v4001_v21 = vld [vmem:[#allocation10 + $0x28] sm:$0xff]  }
 0xd56   :  { %v2293_v28 = vmax.f32 %v2233_v23, 0.0 }
 0xd57   :  { %v2309_v29 = vpack.c.bf16 %v2295_v25, %v2294_v24 }
 0xd58   :  { %v2308_v30 = vpack.c.bf16 %v2293_v28, %v2292_v27  ;;  %v3768_v31 = vpop.f32.mrb[100].mxu1 }
 0xd59   :  { %v2254_v26 = vadd.f32 %v3768_v31, %v3022_v14  ;;  %v2245_v32 = vpop.f32.mrb[101].mxu1 }
 0xd5a   :  { %v2246_v33 = vadd.f32 %v3022_v14, %v2245_v32  ;;  %v3769_v34 = vpop.f32.mrb[102].mxu1  ;;  %3794 = vmatprep.mubr.bf16.mxu0 %v2308_v30 }
 0xd5b   :  { %v2257_v35 = vadd.f32 %v3769_v34, %v3022_v14  ;;  %v2248_v47 = vpop.f32.mrb[103].mxu1  ;;  %3795 = vmatmul.mubr.bf16.vlgmr.msra.gmra.mrb[112].mxu0 %v2309_v29  ;;  %v2298_v50 = vmax.f32 %v2254_v26, 0.0 }
 0xd5c   :  { %v2249_v48 = vadd.f32 %v3022_v14, %v2248_v47  ;;  %v2296_v36 = vmax.f32 %v2246_v33, 0.0  ;;  %3843 = vmatpush3.bf16.msra.mxu0 %v3996_v17 }
 0xd5d   :  { %v2299_v51 = vmax.f32 %v2257_v35, 0.0  ;;  %3844 = vmatprep.subr.bf16.mxu0 %v3997_v18 }
 0xd5e   :  { %v2297_v52 = vmax.f32 %v2249_v48, 0.0 }
 0xd5f   :  { %v2311_v37 = vpack.c.bf16 %v2299_v51, %v2298_v50 }
 0xd60   :  { %v2310_v49 = vpack.c.bf16 %v2297_v52, %v2296_v36  ;;  %v3772_v53 = vpop.f32.mrb[104].mxu1  ;;  %3845 = vmatpush3.bf16.msra.mxu0 %v3997_v18 }
 0xd61   :  { %v2270_v38 = vadd.f32 %v3772_v53, %v3022_v14  ;;  %v2261_v16 = vpop.f32.mrb[105].mxu1  ;;  %3846 = vmatprep.subr.bf16.mxu0 %v3998_v19 }
 0xd62   :  { %v2262_v39 = vadd.f32 %v3022_v14, %v2261_v16  ;;  %v3773_v40 = vpop.f32.mrb[106].mxu1  ;;  %3798 = vmatprep.mubr.bf16.mxu0 %v2310_v49  ;;  %v4002_v16 = vld [vmem:[#allocation10 + $0x30] sm:$0xff]  }
 0xd63   :  { %v2273_v41 = vadd.f32 %v3773_v40, %v3022_v14  ;;  %v2264_v42 = vpop.f32.mrb[107].mxu1  ;;  %3799 = vmatmul.mubr.bf16.gmra.mrb[116].mxu0 %v2311_v37  ;;  %v2302_v44 = vmax.f32 %v2270_v38, 0.0 }
 0xd64   :  { %v2265_v43 = vadd.f32 %v3022_v14, %v2264_v42  ;;  %v2300_v46 = vmax.f32 %v2262_v39, 0.0  ;;  %3847 = vmatpush3.bf16.msra.mxu0 %v3998_v19  ;;  %v4003_v39 = vld [vmem:[#allocation10 + $0x38] sm:$0xff]  }
 0xd65   :  { %v2303_v45 = vmax.f32 %v2273_v41, 0.0  ;;  %3848 = vmatprep.subr.bf16.mxu0 %v3999_v20 }
 0xd66   :  { %v2301_v54 = vmax.f32 %v2265_v43, 0.0 }
 0xd67   :  { %v2313_v55 = vpack.c.bf16 %v2303_v45, %v2302_v44 }
 0xd68   :  { %v2312_v57 = vpack.c.bf16 %v2301_v54, %v2300_v46  ;;  %v3776_v58 = vpop.f32.mrb[108].mxu1  ;;  %3849 = vmatpush3.bf16.msra.mxu0 %v3999_v20 }
 0xd69   :  { %v2286_v3 = vadd.f32 %v3776_v58, %v3022_v14  ;;  %v2277_v4 = vpop.f32.mrb[109].mxu1 }
 0xd6a   :  { %v2278_v6 = vadd.f32 %v3022_v14, %v2277_v4  ;;  %v3777_v7 = vpop.f32.mrb[110].mxu1  ;;  %3802 = vmatprep.mubr.bf16.mxu0 %v2312_v57 }
 0xd6b   :  { %v2289_v2 = vadd.f32 %v3777_v7, %v3022_v14  ;;  %v2280_v8 = vpop.f32.mrb[111].mxu1  ;;  %3803 = vmatmul.mubr.bf16.gmra.mrb[120].mxu0 %v2313_v55  ;;  %v2306_v5 = vmax.f32 %v2286_v3, 0.0 }
 0xd6c   :  { %v2281_v9 = vadd.f32 %v3022_v14, %v2280_v8  ;;  %v2304_v11 = vmax.f32 %v2278_v6, 0.0  ;;  %v4000_v14 = vld [vmem:[#allocation10 + $0x20] sm:$0xff]  }
 0xd6d   :  { %v2307_v10 = vmax.f32 %v2289_v2, 0.0  ;;  %3850 = vmatprep.subr.bf16.mxu0 %v4000_v14 }
 0xd6e   :  { %v2305_v12 = vmax.f32 %v2281_v9, 0.0  ;;  %3851 = vmatpush3.bf16.msra.mxu0 %v4000_v14 }
 0xd6f   :  { %v2315_v13 = vpack.c.bf16 %v2307_v10, %v2306_v5  ;;  %3852 = vmatprep.subr.bf16.mxu0 %v4001_v21 }
 0xd70   :  { %v2314_v15 = vpack.c.bf16 %v2305_v12, %v2304_v11 }
 0xd72   :  { %3806 = vmatprep.mubr.bf16.mxu0 %v2314_v15  ;;  %3853 = vmatpush3.bf16.msra.mxu0 %v4001_v21 }
 0xd73   :  { %3807 = vmatmul.mubr.bf16.gmra.mrb[124].mxu0 %v2315_v13  ;;  %3854 = vmatprep.subr.bf16.mxu0 %v4002_v16 }
 0xd76   :  { %3855 = vmatpush3.bf16.msra.mxu0 %v4002_v16 }
 0xd77   :  { %3856 = vmatprep.subr.bf16.mxu0 %v4003_v39 }
 0xd7a   :  { %3857 = vmatpush3.bf16.msra.mxu0 %v4003_v39 }
 0xe2e   :  { %v3796_v22 = vpop.f32.mrb[112].mxu0 }
 0xe2f   :  { %v2417_v23 = vpop.f32.mrb[113].mxu0 }
 0xe30   :  { %v3797_v24 = vpop.f32.mrb[114].mxu0 }
 0xe31   :  { %v2481_v25 = vpack.c.bf16 %v3797_v24, %v3796_v22  ;;  %v2420_v27 = vpop.f32.mrb[115].mxu0 }
 0xe32   :  { %v2480_v28 = vpack.c.bf16 %v2420_v27, %v2417_v23 }
 0xe34   :  { %3810 = vmatprep.subr.bf16.mxu1 %v2480_v28 }
 0xe35   :  { %3811 = vmatpush3.bf16.msra.mxu1 %v2480_v28 }
 0xe36   :  { %v3800_v29 = vpop.f32.mrb[116].mxu0  ;;  %3812 = vmatprep.subr.bf16.mxu1 %v2481_v25 }
 0xe37   :  { %v2433_v30 = vpop.f32.mrb[117].mxu0 }
 0xe38   :  { %v3801_v31 = vpop.f32.mrb[118].mxu0 }
 0xe39   :  { %v2483_v26 = vpack.c.bf16 %v3801_v31, %v3800_v29  ;;  %v2436_v32 = vpop.f32.mrb[119].mxu0  ;;  %3813 = vmatpush3.bf16.msra.mxu1 %v2481_v25 }
 0xe3a   :  { %v2482_v33 = vpack.c.bf16 %v2436_v32, %v2433_v30 }
 0xe3c   :  { %3814 = vmatprep.subr.bf16.mxu1 %v2482_v33 }
 0xe3d   :  { %3815 = vmatpush3.bf16.msra.mxu1 %v2482_v33 }
 0xe3e   :  { %v3804_v34 = vpop.f32.mrb[120].mxu0  ;;  %3816 = vmatprep.subr.bf16.mxu1 %v2483_v26 }
 0xe3f   :  { %v2449_v35 = vpop.f32.mrb[121].mxu0 }
 0xe40   :  { %v3805_v47 = vpop.f32.mrb[122].mxu0 }
 0xe41   :  { %v2485_v48 = vpack.c.bf16 %v3805_v47, %v3804_v34  ;;  %v2452_v50 = vpop.f32.mrb[123].mxu0  ;;  %3817 = vmatpush3.bf16.msra.mxu1 %v2483_v26 }
 0xe42   :  { %v2484_v51 = vpack.c.bf16 %v2452_v50, %v2449_v35 }
 0xe44   :  { %3818 = vmatprep.subr.bf16.mxu1 %v2484_v51 }
 0xe45   :  { %3819 = vmatpush3.bf16.msra.mxu1 %v2484_v51 }
 0xe46   :  { %v3808_v36 = vpop.f32.mrb[124].mxu0  ;;  %3820 = vmatprep.subr.bf16.mxu1 %v2485_v48 }
 0xe47   :  { %v2465_v52 = vpop.f32.mrb[125].mxu0 }
 0xe48   :  { %v3809_v37 = vpop.f32.mrb[126].mxu0 }
 0xe49   :  { %v2487_v49 = vpack.c.bf16 %v3809_v37, %v3808_v36  ;;  %v2468_v53 = vpop.f32.mrb[127].mxu0  ;;  %3821 = vmatpush3.bf16.msra.mxu1 %v2485_v48 }
 0xe4a   :  { %v2486_v38 = vpack.c.bf16 %v2468_v53, %v2465_v52 }
 0xe4c   :  { %3822 = vmatprep.subr.bf16.mxu1 %v2486_v38 }
 0xe4d   :  { %3823 = vmatpush3.bf16.msra.mxu1 %v2486_v38 }
 0xe4e   :  { %3824 = vmatprep.subr.bf16.mxu1 %v2487_v49 }
 0xe51   :  { %3825 = vmatpush3.bf16.msra.mxu1 %v2487_v49 }
 0xe54   :  { %3827 = vmatmul.mubr.bf16.vlgmr.msra.gmra.mrb[112].mxu1 %v4364_v59  ;;  %v3032_v59 = vld [vmem:[%s4444_s5 + $0x6] ss:$0 sm:$0xff] }
 0xe55   :  { %3830 = vmatprep.mubr.bf16.mxu1 %v4367_v60 }
 0xe5c   :  { %3831 = vmatmul.mubr.bf16.gmra.mrb[116].mxu1 %v4370_v61 }
 0xe5d   :  { %3834 = vmatprep.mubr.bf16.mxu1 %v4373_v56 }
 0xe64   :  { %3835 = vmatmul.mubr.bf16.gmra.mrb[120].mxu1 %v4376_v62 }
 0xe65   :  { %3838 = vmatprep.mubr.bf16.mxu1 %v4379_v63 }
 0xe6c   :  { %3839 = vmatmul.mubr.bf16.gmra.mrb[124].mxu1 %v4382_v0 }
 0xe6d   :  { %3890 = vmatprep.mubr.bf16.mxu1 %v4385_v1 }
 0xf27   :  { %v3828_v60 = vpop.f32.mrb[112].mxu1 }
 0xf28   :  { %v2537_v61 = vadd.f32 %v3828_v60, %v3032_v59  ;;  %v2528_v56 = vpop.f32.mrb[113].mxu1 }
 0xf29   :  { %v2529_v62 = vadd.f32 %v3032_v59, %v2528_v56  ;;  %v3829_v40 = vpop.f32.mrb[114].mxu1 }
 0xf2a   :  { %v2540_v63 = vadd.f32 %v3829_v40, %v3032_v59  ;;  %v2531_v41 = vpop.f32.mrb[115].mxu1  ;;  %v2593_v42 = vmax.f32 %v2537_v61, 0.0 }
 0xf2b   :  { %v2532_v0 = vadd.f32 %v3032_v59, %v2531_v41  ;;  %v2591_v43 = vmax.f32 %v2529_v62, 0.0 }
 0xf2c   :  { %v2594_v1 = vmax.f32 %v2540_v63, 0.0 }
 0xf2d   :  { %v2592_v44 = vmax.f32 %v2532_v0, 0.0 }
 0xf2e   :  { %v2608_v45 = vpack.c.bf16 %v2594_v1, %v2593_v42 }
 0xf2f   :  { %v2607_v46 = vpack.c.bf16 %v2592_v44, %v2591_v43  ;;  %v3832_v54 = vpop.f32.mrb[116].mxu1 }
 0xf30   :  { %v2553_v55 = vadd.f32 %v3832_v54, %v3032_v59  ;;  %v2544_v57 = vpop.f32.mrb[117].mxu1 }
 0xf31   :  { %v2545_v58 = vadd.f32 %v3032_v59, %v2544_v57  ;;  %v3833_v3 = vpop.f32.mrb[118].mxu1  ;;  %3858 = vmatprep.mubr.bf16.mxu0 %v2607_v46  ;;  %v4012_v57 = vld [vmem:[#allocation2 + $0x8] sm:$0xff]  }
 0xf32   :  { %v2556_v4 = vadd.f32 %v3833_v3, %v3032_v59  ;;  %v2547_v6 = vpop.f32.mrb[119].mxu1  ;;  %3859 = vmatmul.mubr.bf16.vlgmr.msra.gmra.mrb[128].mxu0 %v2608_v45  ;;  %v2597_v2 = vmax.f32 %v2553_v55, 0.0  ;;  %v4014_v3 = vld [vmem:[#allocation2 + $0x18] sm:$0xff]  }
 0xf33   :  { %v2548_v7 = vadd.f32 %v3032_v59, %v2547_v6  ;;  %v2595_v9 = vmax.f32 %v2545_v58, 0.0  ;;  %v4013_v58 = vld [vmem:[#allocation2 + $0x10] sm:$0xff]   ;;  %v4016_v6 = vld [vmem:[#allocation2 + $0x28] sm:$0xff]  }
 0xf34   :  { %v2598_v8 = vmax.f32 %v2556_v4, 0.0  ;;  %v4015_v4 = vld [vmem:[#allocation2 + $0x20] sm:$0xff]  }
 0xf35   :  { %v2596_v5 = vmax.f32 %v2548_v7, 0.0  ;;  %v4017_v7 = vld [vmem:[#allocation2 + $0x30] sm:$0xff]  }
 0xf36   :  { %v2610_v10 = vpack.c.bf16 %v2598_v8, %v2597_v2  ;;  %v4018_v2 = vld [vmem:[#allocation2 + $0x38] sm:$0xff]   ;;  %v3041_v8 = vld [vmem:[%s4446_s7] ss:$0 sm:$0xff]  ;;  %s4166_s7 = smov [#allocation11]  }
 0xf37   :  { %v2609_v11 = vpack.c.bf16 %v2596_v5, %v2595_v9  ;;  %v3836_v12 = vpop.f32.mrb[120].mxu1  ;;  %s2925_s11 = sshll.u32 %s4166_s7, 4  ;;  %s2926_s11 = int_to_ptr.vmem [resolvable:$true] %s2925_s11 }
 0xf38   :  { %v2569_v13 = vadd.f32 %v3836_v12, %v3032_v59  ;;  %v2560_v15 = vpop.f32.mrb[121].mxu1  ;;  %s4129_s13 = scalar_lea.vmem %s2926_s11, 2048  ;;  %p4134_p13 = scmp.lt.s32.totalorder %s2926_s11, %s2926_s11 }
 0xf39   :  { %v2561_v17 = vadd.f32 %v3032_v59, %v2560_v15  ;;  %v3837_v18 = vpop.f32.mrb[122].mxu1  ;;  %3862 = vmatprep.mubr.bf16.mxu0 %v2609_v11  ;;  %p4130_p12 = scmp.ne.s32.totalorder %s2926_s11, %s4129_s13  ;;  %p4135_p0 = scmp.lt.s32.totalorder %s4129_s13, %s4129_s13 }
 0xf3a   :  { %v2572_v19 = vadd.f32 %v3837_v18, %v3032_v59  ;;  %v2563_v20 = vpop.f32.mrb[123].mxu1  ;;  %3863 = vmatmul.mubr.bf16.gmra.mrb[132].mxu0 %v2610_v10  ;;  %v2601_v21 = vmax.f32 %v2569_v13, 0.0 }
 0xf3b   :  { %v2564_v14 = vadd.f32 %v3032_v59, %v2563_v20  ;;  %v2599_v23 = vmax.f32 %v2561_v17, 0.0  ;;  %p4136_p1 = por %p4135_p0, %p4134_p13 }
 0xf3c   :  { %v2602_v22 = vmax.f32 %v2572_v19, 0.0 }
 0xf3d   :  { %v2600_v24 = vmax.f32 %v2564_v14, 0.0  ;;  %p4137_p2 = pnand %p4136_p1, %p4130_p12 }
 0xf3e   :  { %v2612_v25 = vpack.c.bf16 %v2602_v22, %v2601_v21 }
 0xf3f   :  { %v2611_v27 = vpack.c.bf16 %v2600_v24, %v2599_v23  ;;  %v3840_v28 = vpop.f32.mrb[124].mxu1 }
 0xf40   :  { %v2585_v29 = vadd.f32 %v3840_v28, %v3032_v59  ;;  %v2576_v30 = vpop.f32.mrb[125].mxu1 }
 0xf41   :  { %v2577_v31 = vadd.f32 %v3032_v59, %v2576_v30  ;;  %v3841_v26 = vpop.f32.mrb[126].mxu1  ;;  %3866 = vmatprep.mubr.bf16.mxu0 %v2611_v27 }
 0xf42   :  { %v2588_v32 = vadd.f32 %v3841_v26, %v3032_v59  ;;  %v2579_v33 = vpop.f32.mrb[127].mxu1  ;;  %3867 = vmatmul.mubr.bf16.gmra.mrb[136].mxu0 %v2612_v25  ;;  %v2605_v35 = vmax.f32 %v2585_v29, 0.0 }
 0xf43   :  { %v2580_v34 = vadd.f32 %v3032_v59, %v2579_v33  ;;  %v2603_v48 = vmax.f32 %v2577_v31, 0.0 }
 0xf44   :  { %v2606_v47 = vmax.f32 %v2588_v32, 0.0 }
 0xf45   :  { %v2604_v50 = vmax.f32 %v2580_v34, 0.0 }
 0xf46   :  { %v2614_v51 = vpack.c.bf16 %v2606_v47, %v2605_v35 }
 0xf47   :  { %v2613_v36 = vpack.c.bf16 %v2604_v50, %v2603_v48 }
 0xf49   :  { %3870 = vmatprep.mubr.bf16.mxu0 %v2613_v36 }
 0xf4a   :  { %3871 = vmatmul.mubr.bf16.gmra.mrb[140].mxu0 %v2614_v51 }
0x1005   :  { %v3860_v52 = vpop.f32.mrb[128].mxu0 }
0x1006   :  { %v2714_v37 = vpop.f32.mrb[129].mxu0 }
0x1007   :  { %v3861_v49 = vpop.f32.mrb[130].mxu0 }
0x1008   :  { %v2778_v53 = vpack.c.bf16 %v3861_v49, %v3860_v52  ;;  %v2717_v38 = vpop.f32.mrb[131].mxu0 }
0x1009   :  { %v2777_v16 = vpack.c.bf16 %v2717_v38, %v2714_v37 }
0x100b   :  { %3874 = vmatprep.subr.bf16.mxu1 %v2777_v16 }
0x100c   :  { %3875 = vmatpush3.bf16.msra.mxu1 %v2777_v16 }
0x100d   :  { %v3864_v39 = vpop.f32.mrb[132].mxu0  ;;  %3876 = vmatprep.subr.bf16.mxu1 %v2778_v53 }
0x100e   :  { %v2730_v60 = vpop.f32.mrb[133].mxu0 }
0x100f   :  { %v3865_v59 = vpop.f32.mrb[134].mxu0 }
0x1010   :  { %v2780_v61 = vpack.c.bf16 %v3865_v59, %v3864_v39  ;;  %v2733_v56 = vpop.f32.mrb[135].mxu0  ;;  %3877 = vmatpush3.bf16.msra.mxu1 %v2778_v53 }
0x1011   :  { %v2779_v62 = vpack.c.bf16 %v2733_v56, %v2730_v60 }
0x1013   :  { %3878 = vmatprep.subr.bf16.mxu1 %v2779_v62 }
0x1014   :  { %3879 = vmatpush3.bf16.msra.mxu1 %v2779_v62 }
0x1015   :  { %v3868_v40 = vpop.f32.mrb[136].mxu0  ;;  %3880 = vmatprep.subr.bf16.mxu1 %v2780_v61 }
0x1016   :  { %v2746_v63 = vpop.f32.mrb[137].mxu0 }
0x1017   :  { %v3869_v41 = vpop.f32.mrb[138].mxu0 }
0x1018   :  { %v2782_v0 = vpack.c.bf16 %v3869_v41, %v3868_v40  ;;  %v2749_v42 = vpop.f32.mrb[139].mxu0  ;;  %3881 = vmatpush3.bf16.msra.mxu1 %v2780_v61 }
0x1019   :  { %v2781_v1 = vpack.c.bf16 %v2749_v42, %v2746_v63 }
0x101b   :  { %3882 = vmatprep.subr.bf16.mxu1 %v2781_v1 }
0x101c   :  { %3883 = vmatpush3.bf16.msra.mxu1 %v2781_v1 }
0x101d   :  { %v3872_v43 = vpop.f32.mrb[140].mxu0  ;;  %3884 = vmatprep.subr.bf16.mxu1 %v2782_v0 }
0x101e   :  { %v2762_v44 = vpop.f32.mrb[141].mxu0 }
0x101f   :  { %v3873_v45 = vpop.f32.mrb[142].mxu0 }
0x1020   :  { %v2784_v46 = vpack.c.bf16 %v3873_v45, %v3872_v43  ;;  %v2765_v54 = vpop.f32.mrb[143].mxu0  ;;  %3885 = vmatpush3.bf16.msra.mxu1 %v2782_v0 }
0x1021   :  { %v2783_v55 = vpack.c.bf16 %v2765_v54, %v2762_v44 }
0x1023   :  { %3886 = vmatprep.subr.bf16.mxu1 %v2783_v55 }
0x1024   :  { %3887 = vmatpush3.bf16.msra.mxu1 %v2783_v55 }
0x1025   :  { %3888 = vmatprep.subr.bf16.mxu1 %v2784_v46 }
0x1028   :  { %3889 = vmatpush3.bf16.msra.mxu1 %v2784_v46 }
0x102b   :  { %3891 = vmatmul.mubr.bf16.vlgmr.msra.gmra.mrb[128].mxu1 %v4012_v57 }
0x102c   :  { %3894 = vmatprep.mubr.bf16.mxu1 %v4013_v58 }
0x1033   :  { %3895 = vmatmul.mubr.bf16.gmra.mrb[132].mxu1 %v4014_v3 }
0x1034   :  { %3898 = vmatprep.mubr.bf16.mxu1 %v4015_v4 }
0x103b   :  { %3899 = vmatmul.mubr.bf16.gmra.mrb[136].mxu1 %v4016_v6 }
0x103c   :  { %3902 = vmatprep.mubr.bf16.mxu1 %v4017_v7 }
0x1043   :  { %3903 = vmatmul.mubr.bf16.gmra.mrb[140].mxu1 %v4018_v2 }
0x10fe   :  { %v3892_v9 = vpop.f32.mrb[128].mxu1 }
0x10ff   :  { %v2834_v5 = vadd.f32 %v3892_v9, %v3041_v8  ;;  %v2825_v10 = vpop.f32.mrb[129].mxu1 }
0x1100   :  { %v2826_v11 = vadd.f32 %v3041_v8, %v2825_v10  ;;  %v3893_v12 = vpop.f32.mrb[130].mxu1 }
0x1101   :  { %v2890_v13 = vmax.f32 %v2834_v5, 0.0  ;;  %v2837_v15 = vadd.f32 %v3893_v12, %v3041_v8  ;;  %v2828_v17 = vpop.f32.mrb[131].mxu1 }
0x1102   :  { %v2888_v18 = vmax.f32 %v2826_v11, 0.0  ;;  %v2829_v19 = vadd.f32 %v3041_v8, %v2828_v17 }
0x1103   :  { %2906 = vst [vmem:[#allocation11 + $0x10] sm:$0xff] %v2890_v13  ;;  %v2891_v20 = vmax.f32 %v2837_v15, 0.0 }
0x1104   :  { %2904 = vst [vmem:[#allocation11] sm:$0xff] %v2888_v18  ;;  %v2889_v14 = vmax.f32 %v2829_v19, 0.0 }
0x1105   :  { %2907 = vst [vmem:[#allocation11 + $0x18] sm:$0xff] %v2891_v20 }
0x1106   :  { %2905 = vst [vmem:[#allocation11 + $0x8] sm:$0xff] %v2889_v14  ;;  %v3896_v21 = vpop.f32.mrb[132].mxu1 }
0x1107   :  { %v2850_v22 = vadd.f32 %v3896_v21, %v3041_v8  ;;  %v2841_v23 = vpop.f32.mrb[133].mxu1 }
0x1108   :  { %v2842_v24 = vadd.f32 %v3041_v8, %v2841_v23  ;;  %v3897_v25 = vpop.f32.mrb[134].mxu1 }
0x1109   :  { %v2894_v27 = vmax.f32 %v2850_v22, 0.0  ;;  %v2853_v28 = vadd.f32 %v3897_v25, %v3041_v8  ;;  %v2844_v29 = vpop.f32.mrb[135].mxu1 }
0x110a   :  { %v2892_v30 = vmax.f32 %v2842_v24, 0.0  ;;  %v2845_v31 = vadd.f32 %v3041_v8, %v2844_v29 }
0x110b   :  { %2910 = vst [vmem:[#allocation11 + $0x30] sm:$0xff] %v2894_v27  ;;  %v2895_v26 = vmax.f32 %v2853_v28, 0.0 }
0x110c   :  { %2908 = vst [vmem:[#allocation11 + $0x20] sm:$0xff] %v2892_v30  ;;  %v2893_v32 = vmax.f32 %v2845_v31, 0.0 }
0x110d   :  { %2911 = vst [vmem:[#allocation11 + $0x38] sm:$0xff] %v2895_v26 }
0x110e   :  { %2909 = vst [vmem:[#allocation11 + $0x28] sm:$0xff] %v2893_v32  ;;  %v3900_v33 = vpop.f32.mrb[136].mxu1 }
0x110f   :  { %v2866_v34 = vadd.f32 %v3900_v33, %v3041_v8  ;;  %v2857_v35 = vpop.f32.mrb[137].mxu1 }
0x1110   :  { %v2858_v47 = vadd.f32 %v3041_v8, %v2857_v35  ;;  %v3901_v48 = vpop.f32.mrb[138].mxu1 }
0x1111   :  { %v2898_v50 = vmax.f32 %v2866_v34, 0.0  ;;  %v2869_v51 = vadd.f32 %v3901_v48, %v3041_v8  ;;  %v2860_v36 = vpop.f32.mrb[139].mxu1 }
0x1112   :  { %v2896_v52 = vmax.f32 %v2858_v47, 0.0  ;;  %v2861_v37 = vadd.f32 %v3041_v8, %v2860_v36 }
0x1113   :  { %2914 = vst [vmem:[#allocation11 + $0x50] sm:$0xff] %v2898_v50  ;;  %v2899_v49 = vmax.f32 %v2869_v51, 0.0 }
0x1114   :  { %2912 = vst [vmem:[#allocation11 + $0x40] sm:$0xff] %v2896_v52  ;;  %v2897_v53 = vmax.f32 %v2861_v37, 0.0 }
0x1115   :  { %2915 = vst [vmem:[#allocation11 + $0x58] sm:$0xff] %v2899_v49 }
0x1116   :  { %2913 = vst [vmem:[#allocation11 + $0x48] sm:$0xff] %v2897_v53  ;;  %v3904_v38 = vpop.f32.mrb[140].mxu1 }
0x1117   :  { %v2882_v16 = vadd.f32 %v3904_v38, %v3041_v8  ;;  %v2873_v39 = vpop.f32.mrb[141].mxu1 }
0x1118   :  { %v2874_v60 = vadd.f32 %v3041_v8, %v2873_v39  ;;  %v3905_v59 = vpop.f32.mrb[142].mxu1 }
0x1119   :  { %v2902_v61 = vmax.f32 %v2882_v16, 0.0  ;;  %v2885_v56 = vadd.f32 %v3905_v59, %v3041_v8  ;;  %v2876_v62 = vpop.f32.mrb[143].mxu1 }
0x111a   :  { %v2900_v40 = vmax.f32 %v2874_v60, 0.0  ;;  %v2877_v63 = vadd.f32 %v3041_v8, %v2876_v62 }
0x111b   :  { %2918 = vst [vmem:[#allocation11 + $0x70] sm:$0xff] %v2902_v61  ;;  %v2903_v41 = vmax.f32 %v2885_v56, 0.0 }
0x111c   :  { %2916 = vst [vmem:[#allocation11 + $0x60] sm:$0xff] %v2900_v40  ;;  %v2901_v0 = vmax.f32 %v2877_v63, 0.0 }
0x111d   :  { %2919 = vst [vmem:[#allocation11 + $0x78] sm:$0xff] %v2903_v41 }
0x111e   :  { %2917 = vst [vmem:[#allocation11 + $0x68] sm:$0xff] %v2901_v0 }
0x111f   :  { %4140 = shalt.err (!%p4137_p2)
}
0x1120   :  { %s4141_s16 = scalar_lea.hbm %s4447_s8, 2048 }
0x1121   :  { %p4142_p3 = scmp.ne.s32.totalorder %s4447_s8, %s4141_s16  ;;  %p4145_p4 = scmp.lt.u32.totalorder %s4141_s16, %s4447_s8 }
0x1123   :  { %p4147_p5 = pnand %p4145_p4, %p4142_p3 }
0x1125   :  { %4150 = shalt.err (!%p4147_p5)
}
0x1126   :  { %s4167_s2 = smov 128   ;;  %s4168_s12 = smov 8  }
0x1127   :  { %2931 = dma.vmem_to_hbm [thread:$0]  %s2926_s11, 2048, %s4447_s8, [#allocation4], %s4167_s2, %s4167_s2, %s4168_s12  }
0x1128   :  { %4157 = dma.done.wait [#allocation4], 2048  }
0x1129   :  { %4158 = vsyncadd [#allocation4], 4294965248 }
0x112a   :  { %2935 = vsyncpa [#allocation3], 1 }
0x112b   :  { %2936 = vsyncpa [#allocation6], 1 }
0x112c   :  { %2937 = vsyncpa [#allocation9], 1 }
0x112d   :  { %2938 = vsyncpa [#allocation4], 1 }

</bundles_post_ra>
